<compile_context>
chip_gen: v5e
topology: v5e:2x2
jax: 0.10.0
libtpu: 0.0.40
codegen_flags: <defaults>
</compile_context>

<pallas_src>
import functools

import jax
import jax.numpy as jnp
from jax import lax
from jax.experimental import pallas as pl
from jax.experimental.pallas import tpu as pltpu

LANES = 128
SUBLANES = 8


def _round_up(x, m):
    return -(-x // m) * m


def conv_block_kernel(x_ref, w_ref, b_ref, o_ref, patch_ref, *, TH, W, KH, KW, K):
    """One (batch, H-tile) grid step.

    x_ref:     (Hp, Wp, Cin)       padded image of this batch element (compute dtype)
    w_ref:     (K_pad, Cout_eff)   im2col weights; rows [K, K_pad) are zero
    b_ref:     (1, Cout_eff)       f32 bias
    o_ref:     (TH*W, Cout_eff)    output tile
    patch_ref: (TH*W, K_pad)       persistent VMEM scratch for the im2col patch
    """
    Cin = x_ref.shape[-1]
    M, K_pad = patch_ref.shape
    h = pl.program_id(1)
    r0 = pl.multiple_of(h * TH, TH)          # first output row of this tile

    # Zero the contraction lane padding so (uninitialized VMEM) * (zero weight)
    # can never inject NaNs. The real columns below are fully overwritten.
    if K_pad > K:
        patch_ref[:, K:] = jnp.zeros((M, K_pad - K), patch_ref.dtype)

    # im2col with a SINGLE materialization: each shifted window is written
    # straight into the persistent patch scratch.
    t = 0
    for dy in range(KH):
        for dx in range(KW):
            tap = x_ref[pl.ds(r0 + dy, TH), dx:dx + W, :]          # (TH, W, Cin)
            patch_ref[:, t * Cin:(t + 1) * Cin] = tap.reshape(M, Cin)
            t += 1

    # One MXU contraction over the lane-padded K, f32 accumulation.
    acc = lax.dot_general(
        patch_ref[...], w_ref[...],
        dimension_numbers=(((1,), (0,)), ((), ())),
        preferred_element_type=jnp.float32)                        # (M, Cout_eff) f32

    # Strictly-f32 epilogue (bias + ReLU); cast only at the store.
    o_ref[...] = jnp.maximum(acc + b_ref[...], 0.0).astype(o_ref.dtype)


def _choose_tile_rows(H, W, per_row_bytes, tile_budget_bytes=6 << 20, target_m=1024):
    """Pick TH so M = TH*W is MXU-friendly (256/128 multiple, ~target_m) and fits."""
    divs = [t for t in range(1, H + 1) if H % t == 0]
    fits = [t for t in divs if t * W * per_row_bytes <= tile_budget_bytes] or [1]

    def score(t):
        m = t * W
        align = 3 if m % 256 == 0 else 2 if m % 128 == 0 else 1 if m % SUBLANES == 0 else 0
        return (align, -abs(m - target_m))

    th = max(fits, key=score)
    # Output block's second-to-last dim must be a multiple of 8 unless it spans H*W.
    if (th * W) % SUBLANES != 0 and th != H:
        th = H
    return th


def conv_block_nhwc(x_nhwc, w_oihw, bias, *, stride=1,
                    compute_dtype=jnp.bfloat16, out_dtype=None):
    """ConvBlock forward (NHWC in / NHWC out): Conv2d(k, s=1, p=k//2) + ReLU."""
    assert stride == 1, "ConvBlock default stride=1 implemented"
    N, H, W, Cin = x_nhwc.shape
    Cout, Cin_w, KH, KW = w_oihw.shape
    assert Cin_w == Cin and KH == KW and KH % 2 == 1, "odd square kernel only"
    out_dtype = x_nhwc.dtype if out_dtype is None else out_dtype
    pad = KH // 2
    Hp, Wp = H + 2 * pad, W + 2 * pad

    # --- padding policy ------------------------------------------------------
    K = KH * KW * Cin
    K_pad = _round_up(K, LANES)                      # lane-aligned contraction
    Cout_lane = _round_up(Cout, LANES)
    # Lane-dense (unmasked) stores only when writeback inflation stays <= 2x.
    Cout_eff = Cout_lane if Cout_lane <= 2 * Cout else Cout

    # --- wrapper-side layout glue (cast + spatial pad once) ------------------
    # TODO(synk): in a full NHWC/bf16 model keep activations NHWC end-to-end and
    # fold the zero-pad into the kernel's input DMA to drop these HBM passes.
    x_pad = jnp.pad(x_nhwc, ((0, 0), (pad, pad), (pad, pad), (0, 0))).astype(compute_dtype)

    # Weights OIHW -> (KH,KW,Cin,Cout) -> (K, Cout) -> zero-pad to (K_pad, Cout_eff).
    w2 = jnp.transpose(w_oihw, (2, 3, 1, 0)).reshape(K, Cout)
    w2 = jnp.pad(w2, ((0, K_pad - K), (0, Cout_eff - Cout))).astype(compute_dtype)
    b2 = jnp.pad(bias.astype(jnp.float32), (0, Cout_eff - Cout)).reshape(1, Cout_eff)

    cd_size = jnp.dtype(compute_dtype).itemsize
    out_size = jnp.dtype(out_dtype).itemsize

    # --- MXU-shape-aware H tiling --------------------------------------------
    per_row_bytes = K_pad * cd_size + 2 * Cout_eff * out_size + 2 * Cout_eff * 4
    TH = _choose_tile_rows(H, W, per_row_bytes)
    n_h = H // TH
    M = TH * W

    # --- explicit VMEM budget (v5e defaults to 16 MiB scoped; v7x has 64 MiB) --
    cin_lanes = _round_up(Cin, LANES)                # VMEM lane packing of the image
    img_vmem = Hp * _round_up(Wp, SUBLANES) * cin_lanes * cd_size
    budget = (2 * img_vmem                           # double-buffered padded image
              + 2 * K_pad * Cout_eff * cd_size       # weights
              + 2 * SUBLANES * Cout_eff * 4          # bias
              + M * K_pad * cd_size                  # patch scratch
              + 2 * M * Cout_eff * out_size          # double-buffered out tile
              + 2 * M * Cout_eff * 4)                # f32 dot result / epilogue
    vmem_limit = int(min(max(budget * 1.5, 32 << 20), 64 << 20))

    kernel = functools.partial(conv_block_kernel, TH=TH, W=W, KH=KH, KW=KW, K=K)

    cost = pl.CostEstimate(
        flops=2 * N * H * W * K_pad * Cout_eff,
        transcendentals=0,
        bytes_accessed=(N * Hp * Wp * Cin * cd_size
                        + K_pad * Cout_eff * cd_size + Cout_eff * 4
                        + N * H * W * Cout_eff * out_size))

    out_flat = pl.pallas_call(
        kernel,
        out_shape=jax.ShapeDtypeStruct((N, H * W, Cout_eff), out_dtype),
        grid_spec=pltpu.PrefetchScalarGridSpec(
            num_scalar_prefetch=0,
            grid=(N, n_h),
            in_specs=[
                # Padded image: block index constant along h => fetched once per n.
                pl.BlockSpec((None, Hp, Wp, Cin), lambda n, h: (n, 0, 0, 0)),
                pl.BlockSpec((K_pad, Cout_eff), lambda n, h: (0, 0)),
                pl.BlockSpec((1, Cout_eff), lambda n, h: (0, 0)),
            ],
            out_specs=pl.BlockSpec((None, M, Cout_eff), lambda n, h: (n, h, 0)),
            scratch_shapes=[pltpu.VMEM((M, K_pad), compute_dtype)],
        ),
        compiler_params=pltpu.CompilerParams(
            # Every grid point writes a disjoint output tile: no reduction axis,
            # so both axes are parallel (lets v7x's 2 TCs split the h tiles).
            dimension_semantics=("parallel", "parallel"),
            vmem_limit_bytes=vmem_limit),
        cost_estimate=cost,
    )(x_pad, w2, b2)

    out = out_flat.reshape(N, H, W, Cout_eff)
    if Cout_eff != Cout:
        out = out[..., :Cout]           # fused by XLA; skipped when Cout % 128 == 0
    return out


def conv_block(x_nchw, w_oihw, bias, **kwargs):
    """PyTorch-parity wrapper: NCHW in, NCHW out."""
    x_nhwc = jnp.transpose(x_nchw, (0, 2, 3, 1))
    out = conv_block_nhwc(x_nhwc, w_oihw, bias, **kwargs)
    return jnp.transpose(out, (0, 3, 1, 2))


def reference_conv_block(x_nchw, w_oihw, bias):
    # Pure-JAX reference (matches nn.Conv2d NCHW semantics) for validation.
    pad = w_oihw.shape[-1] // 2
    out = lax.conv_general_dilated(
        x_nchw.astype(jnp.float32), w_oihw.astype(jnp.float32),
        window_strides=(1, 1), padding=((pad, pad), (pad, pad)),
        dimension_numbers=("NCHW", "OIHW", "NCHW"))
    out = out + bias.reshape(1, -1, 1, 1)
    return jnp.maximum(out, 0.0).astype(x_nchw.dtype)


if __name__ == "__main__":
    # Deterministic parameter init (synthetic — not a checkpoint load).
    key = jax.random.PRNGKey(0)
    kx, kw, kb = jax.random.split(key, 3)

    N, Cin, H, W = 2, 4, 16, 16
    Cout, Ksz = 8, 3

    x = jax.random.normal(kx, (N, Cin, H, W), dtype=jnp.float32)
    fan_in = Cin * Ksz * Ksz
    bound = 1.0 / (fan_in ** 0.5)  # mimics PyTorch Conv2d default init scale
    w = jax.random.uniform(kw, (Cout, Cin, Ksz, Ksz), jnp.float32, -bound, bound)
    b = jax.random.uniform(kb, (Cout,), jnp.float32, -bound, bound)

    ref = jax.block_until_ready(reference_conv_block(x, w, b))

    # f32 MXU-input path: tight tolerance.
    out_f32 = jax.block_until_ready(conv_block(x, w, b, compute_dtype=jnp.float32))
    assert out_f32.shape == (N, Cout, H, W)
    assert jnp.allclose(out_f32, ref, atol=1e-4, rtol=1e-4), "f32 mismatch vs reference"

    # bf16 MXU-input path (fast MXU path on all generations), f32 accumulate + epilogue.
    out_bf16 = jax.block_until_ready(conv_block(x, w, b, compute_dtype=jnp.bfloat16))
    assert out_bf16.shape == (N, Cout, H, W)
    assert jnp.allclose(out_bf16, ref, atol=3e-2, rtol=3e-2), "bf16 mismatch vs reference"

    print("KERNEL_OK")
</pallas_src>

<mosaic_0001>
module attributes {stable_mosaic.version = 11 : i64} {
  func.func @conv_block_kernel(%arg0: i32, %arg1: i32, %arg2: memref<1x18x18x4xf32, #tpu.memory_space<vmem>>, %arg3: memref<128x8xf32, #tpu.memory_space<vmem>>, %arg4: memref<1x8xf32, #tpu.memory_space<vmem>>, %arg5: memref<1x256x8xf32, #tpu.memory_space<vmem>>, %arg6: memref<256x128xf32, #tpu.memory_space<vmem>>) attributes {dimension_semantics = [#tpu.dimension_semantics<parallel>, #tpu.dimension_semantics<parallel>], iteration_bounds = array<i64: 2, 1>, scalar_prefetch = 0 : i64, scratch_operands = 1 : i64, tpu.core_type = #tpu.core_type<tc>, window_params = [{transform_indices = @transform_0, window_bounds = array<i64: 1, 18, 18, 4>}, {pipeline_mode = #tpu.pipeline_mode<synchronous>, transform_indices = @transform_1, window_bounds = array<i64: 128, 8>}, {pipeline_mode = #tpu.pipeline_mode<synchronous>, transform_indices = @transform_2, window_bounds = array<i64: 1, 8>}, {transform_indices = @transform_3, window_bounds = array<i64: 1, 256, 8>}]} {
    %c16_i32 = arith.constant 16 : i32
    %0 = arith.muli %arg1, %c16_i32 : i32
    %1 = tpu.assume_multiple %0, 16 : i32
    %cst = arith.constant 0.000000e+00 : f32
    %2 = vector.broadcast %cst : f32 to vector<256x92xf32>
    %c0 = arith.constant 0 : index
    %c36 = arith.constant 36 : index
    %3 = vector.load %arg6[%c0, %c36] : memref<256x128xf32, #tpu.memory_space<vmem>>, vector<256x92xf32>
    tpu.vector_store %arg6[%c0, %c36], %2 {strides = array<i32>} : memref<256x128xf32, #tpu.memory_space<vmem>>, vector<256x92xf32>,
    %c0_i32 = arith.constant 0 : i32
    %4 = arith.addi %1, %c0_i32 : i32
    %c0_0 = arith.constant 0 : index
    %5 = arith.index_cast %4 : i32 to index
    %c0_1 = arith.constant 0 : index
    %c0_2 = arith.constant 0 : index
    %6 = vector.load %arg2[%c0_0, %5, %c0_1, %c0_2] : memref<1x18x18x4xf32, #tpu.memory_space<vmem>>, vector<1x16x16x4xf32>
    %7 = vector.shape_cast %6 : vector<1x16x16x4xf32> to vector<16x16x4xf32>
    %8 = vector.shape_cast %7 : vector<16x16x4xf32> to vector<256x4xf32>
    %c0_3 = arith.constant 0 : index
    %c0_4 = arith.constant 0 : index
    %9 = vector.load %arg6[%c0_3, %c0_4] : memref<256x128xf32, #tpu.memory_space<vmem>>, vector<256x4xf32>
    tpu.vector_store %arg6[%c0_3, %c0_4], %8 {strides = array<i32>} : memref<256x128xf32, #tpu.memory_space<vmem>>, vector<256x4xf32>,
    %c0_i32_5 = arith.constant 0 : i32
    %10 = arith.addi %1, %c0_i32_5 : i32
    %c0_6 = arith.constant 0 : index
    %11 = arith.index_cast %10 : i32 to index
    %c1 = arith.constant 1 : index
    %c0_7 = arith.constant 0 : index
    %12 = vector.load %arg2[%c0_6, %11, %c1, %c0_7] : memref<1x18x18x4xf32, #tpu.memory_space<vmem>>, vector<1x16x16x4xf32>
    %13 = vector.shape_cast %12 : vector<1x16x16x4xf32> to vector<16x16x4xf32>
    %14 = vector.shape_cast %13 : vector<16x16x4xf32> to vector<256x4xf32>
    %c0_8 = arith.constant 0 : index
    %c4 = arith.constant 4 : index
    %15 = vector.load %arg6[%c0_8, %c4] : memref<256x128xf32, #tpu.memory_space<vmem>>, vector<256x4xf32>
    tpu.vector_store %arg6[%c0_8, %c4], %14 {strides = array<i32>} : memref<256x128xf32, #tpu.memory_space<vmem>>, vector<256x4xf32>,
    %c0_i32_9 = arith.constant 0 : i32
    %16 = arith.addi %1, %c0_i32_9 : i32
    %c0_10 = arith.constant 0 : index
    %17 = arith.index_cast %16 : i32 to index
    %c2 = arith.constant 2 : index
    %c0_11 = arith.constant 0 : index
    %18 = vector.load %arg2[%c0_10, %17, %c2, %c0_11] : memref<1x18x18x4xf32, #tpu.memory_space<vmem>>, vector<1x16x16x4xf32>
    %19 = vector.shape_cast %18 : vector<1x16x16x4xf32> to vector<16x16x4xf32>
    %20 = vector.shape_cast %19 : vector<16x16x4xf32> to vector<256x4xf32>
    %c0_12 = arith.constant 0 : index
    %c8 = arith.constant 8 : index
    %21 = vector.load %arg6[%c0_12, %c8] : memref<256x128xf32, #tpu.memory_space<vmem>>, vector<256x4xf32>
    tpu.vector_store %arg6[%c0_12, %c8], %20 {strides = array<i32>} : memref<256x128xf32, #tpu.memory_space<vmem>>, vector<256x4xf32>,
    %c1_i32 = arith.constant 1 : i32
    %22 = arith.addi %1, %c1_i32 : i32
    %c0_13 = arith.constant 0 : index
    %23 = arith.index_cast %22 : i32 to index
    %c0_14 = arith.constant 0 : index
    %c0_15 = arith.constant 0 : index
    %24 = vector.load %arg2[%c0_13, %23, %c0_14, %c0_15] : memref<1x18x18x4xf32, #tpu.memory_space<vmem>>, vector<1x16x16x4xf32>
    %25 = vector.shape_cast %24 : vector<1x16x16x4xf32> to vector<16x16x4xf32>
    %26 = vector.shape_cast %25 : vector<16x16x4xf32> to vector<256x4xf32>
    %c0_16 = arith.constant 0 : index
    %c12 = arith.constant 12 : index
    %27 = vector.load %arg6[%c0_16, %c12] : memref<256x128xf32, #tpu.memory_space<vmem>>, vector<256x4xf32>
    tpu.vector_store %arg6[%c0_16, %c12], %26 {strides = array<i32>} : memref<256x128xf32, #tpu.memory_space<vmem>>, vector<256x4xf32>,
    %c1_i32_17 = arith.constant 1 : i32
    %28 = arith.addi %1, %c1_i32_17 : i32
    %c0_18 = arith.constant 0 : index
    %29 = arith.index_cast %28 : i32 to index
    %c1_19 = arith.constant 1 : index
    %c0_20 = arith.constant 0 : index
    %30 = vector.load %arg2[%c0_18, %29, %c1_19, %c0_20] : memref<1x18x18x4xf32, #tpu.memory_space<vmem>>, vector<1x16x16x4xf32>
    %31 = vector.shape_cast %30 : vector<1x16x16x4xf32> to vector<16x16x4xf32>
    %32 = vector.shape_cast %31 : vector<16x16x4xf32> to vector<256x4xf32>
    %c0_21 = arith.constant 0 : index
    %c16 = arith.constant 16 : index
    %33 = vector.load %arg6[%c0_21, %c16] : memref<256x128xf32, #tpu.memory_space<vmem>>, vector<256x4xf32>
    tpu.vector_store %arg6[%c0_21, %c16], %32 {strides = array<i32>} : memref<256x128xf32, #tpu.memory_space<vmem>>, vector<256x4xf32>,
    %c1_i32_22 = arith.constant 1 : i32
    %34 = arith.addi %1, %c1_i32_22 : i32
    %c0_23 = arith.constant 0 : index
    %35 = arith.index_cast %34 : i32 to index
    %c2_24 = arith.constant 2 : index
    %c0_25 = arith.constant 0 : index
    %36 = vector.load %arg2[%c0_23, %35, %c2_24, %c0_25] : memref<1x18x18x4xf32, #tpu.memory_space<vmem>>, vector<1x16x16x4xf32>
    %37 = vector.shape_cast %36 : vector<1x16x16x4xf32> to vector<16x16x4xf32>
    %38 = vector.shape_cast %37 : vector<16x16x4xf32> to vector<256x4xf32>
    %c0_26 = arith.constant 0 : index
    %c20 = arith.constant 20 : index
    %39 = vector.load %arg6[%c0_26, %c20] : memref<256x128xf32, #tpu.memory_space<vmem>>, vector<256x4xf32>
    tpu.vector_store %arg6[%c0_26, %c20], %38 {strides = array<i32>} : memref<256x128xf32, #tpu.memory_space<vmem>>, vector<256x4xf32>,
    %c2_i32 = arith.constant 2 : i32
    %40 = arith.addi %1, %c2_i32 : i32
    %c0_27 = arith.constant 0 : index
    %41 = arith.index_cast %40 : i32 to index
    %c0_28 = arith.constant 0 : index
    %c0_29 = arith.constant 0 : index
    %42 = vector.load %arg2[%c0_27, %41, %c0_28, %c0_29] : memref<1x18x18x4xf32, #tpu.memory_space<vmem>>, vector<1x16x16x4xf32>
    %43 = vector.shape_cast %42 : vector<1x16x16x4xf32> to vector<16x16x4xf32>
    %44 = vector.shape_cast %43 : vector<16x16x4xf32> to vector<256x4xf32>
    %c0_30 = arith.constant 0 : index
    %c24 = arith.constant 24 : index
    %45 = vector.load %arg6[%c0_30, %c24] : memref<256x128xf32, #tpu.memory_space<vmem>>, vector<256x4xf32>
    tpu.vector_store %arg6[%c0_30, %c24], %44 {strides = array<i32>} : memref<256x128xf32, #tpu.memory_space<vmem>>, vector<256x4xf32>,
    %c2_i32_31 = arith.constant 2 : i32
    %46 = arith.addi %1, %c2_i32_31 : i32
    %c0_32 = arith.constant 0 : index
    %47 = arith.index_cast %46 : i32 to index
    %c1_33 = arith.constant 1 : index
    %c0_34 = arith.constant 0 : index
    %48 = vector.load %arg2[%c0_32, %47, %c1_33, %c0_34] : memref<1x18x18x4xf32, #tpu.memory_space<vmem>>, vector<1x16x16x4xf32>
    %49 = vector.shape_cast %48 : vector<1x16x16x4xf32> to vector<16x16x4xf32>
    %50 = vector.shape_cast %49 : vector<16x16x4xf32> to vector<256x4xf32>
    %c0_35 = arith.constant 0 : index
    %c28 = arith.constant 28 : index
    %51 = vector.load %arg6[%c0_35, %c28] : memref<256x128xf32, #tpu.memory_space<vmem>>, vector<256x4xf32>
    tpu.vector_store %arg6[%c0_35, %c28], %50 {strides = array<i32>} : memref<256x128xf32, #tpu.memory_space<vmem>>, vector<256x4xf32>,
    %c2_i32_36 = arith.constant 2 : i32
    %52 = arith.addi %1, %c2_i32_36 : i32
    %c0_37 = arith.constant 0 : index
    %53 = arith.index_cast %52 : i32 to index
    %c2_38 = arith.constant 2 : index
    %c0_39 = arith.constant 0 : index
    %54 = vector.load %arg2[%c0_37, %53, %c2_38, %c0_39] : memref<1x18x18x4xf32, #tpu.memory_space<vmem>>, vector<1x16x16x4xf32>
    %55 = vector.shape_cast %54 : vector<1x16x16x4xf32> to vector<16x16x4xf32>
    %56 = vector.shape_cast %55 : vector<16x16x4xf32> to vector<256x4xf32>
    %c0_40 = arith.constant 0 : index
    %c32 = arith.constant 32 : index
    %57 = vector.load %arg6[%c0_40, %c32] : memref<256x128xf32, #tpu.memory_space<vmem>>, vector<256x4xf32>
    tpu.vector_store %arg6[%c0_40, %c32], %56 {strides = array<i32>} : memref<256x128xf32, #tpu.memory_space<vmem>>, vector<256x4xf32>,
    %c0_41 = arith.constant 0 : index
    %c0_42 = arith.constant 0 : index
    %58 = vector.load %arg6[%c0_41, %c0_42] : memref<256x128xf32, #tpu.memory_space<vmem>>, vector<256x128xf32>
    %c0_43 = arith.constant 0 : index
    %c0_44 = arith.constant 0 : index
    %59 = vector.load %arg3[%c0_43, %c0_44] : memref<128x8xf32, #tpu.memory_space<vmem>>, vector<128x8xf32>
    %cst_45 = arith.constant dense<0.000000e+00> : vector<256x8xf32>
    %60 = tpu.matmul %58, %59, %cst_45 {dimension_numbers = #tpu.dot_dimension_numbers<[1], [0], [0], [1], [0, 0, 1, 1], [], []>} : vector<256x128xf32>, vector<128x8xf32>, vector<256x8xf32> -> vector<256x8xf32>
    %c0_46 = arith.constant 0 : index
    %c0_47 = arith.constant 0 : index
    %61 = vector.load %arg4[%c0_46, %c0_47] : memref<1x8xf32, #tpu.memory_space<vmem>>, vector<1x8xf32>
    %62 = vector.broadcast %61 : vector<1x8xf32> to vector<256x8xf32>
    %63 = arith.addf %60, %62 : vector<256x8xf32>
    %cst_48 = arith.constant 0.000000e+00 : f32
    %64 = vector.broadcast %cst_48 : f32 to vector<256x8xf32>
    %65 = arith.maximumf %63, %64 : vector<256x8xf32>
    %c0_49 = arith.constant 0 : index
    %c0_50 = arith.constant 0 : index
    %c0_51 = arith.constant 0 : index
    %66 = vector.load %arg5[%c0_49, %c0_50, %c0_51] : memref<1x256x8xf32, #tpu.memory_space<vmem>>, vector<1x256x8xf32>
    %67 = vector.shape_cast %66 : vector<1x256x8xf32> to vector<256x8xf32>
    %68 = vector.shape_cast %65 : vector<256x8xf32> to vector<1x256x8xf32>
    tpu.vector_store %arg5[%c0_49, %c0_50, %c0_51], %68 {strides = array<i32>} : memref<1x256x8xf32, #tpu.memory_space<vmem>>, vector<1x256x8xf32>,
    return
  }
  func.func @transform_0(%arg0: i32, %arg1: i32) -> (i32, i32, i32, i32) {
    %c0_i32 = arith.constant 0 : i32
    %c0_i32_0 = arith.constant 0 : i32
    %c0_i32_1 = arith.constant 0 : i32
    %c0_i32_2 = arith.constant 0 : i32
    return %arg0, %c0_i32, %c0_i32_0, %c0_i32_1 : i32, i32, i32, i32
  }
  func.func @transform_1(%arg0: i32, %arg1: i32) -> (i32, i32) {
    %c0_i32 = arith.constant 0 : i32
    %c0_i32_0 = arith.constant 0 : i32
    %c0_i32_1 = arith.constant 0 : i32
    return %c0_i32, %c0_i32_0 : i32, i32
  }
  func.func @transform_2(%arg0: i32, %arg1: i32) -> (i32, i32) {
    %c0_i32 = arith.constant 0 : i32
    %c0_i32_0 = arith.constant 0 : i32
    %c0_i32_1 = arith.constant 0 : i32
    return %c0_i32, %c0_i32_0 : i32, i32
  }
  func.func @transform_3(%arg0: i32, %arg1: i32) -> (i32, i32, i32) {
    %c0_i32 = arith.constant 0 : i32
    %c0_i32_0 = arith.constant 0 : i32
    return %arg0, %arg1, %c0_i32 : i32, i32, i32
  }
}

</mosaic_0001>

<bundles_post_ra>
// kernel: tpu_custom_call.1
= control target key start
LH: loop header
LB: loop body
LE: loop exit
PB: predicated region body
PF: predicated region fallthrough
CT: control target
= control target key end

     0   :  { %s2505_s12 = smov 0   ;;  %s2507_s13 = smov 0   ;;  %s3873_s0 = inlined_call_operand.vmem [shape: f32[2,18,18,4], index: 0, kind: input, shape index: {}]   ;;  %s3874_s1 = inlined_call_operand.vmem [shape: f32[128,8], index: 1, kind: input, shape index: {}]   ;;  %s3875_s2 = inlined_call_operand.vmem [shape: f32[1,8], index: 2, kind: input, shape index: {}]   ;;  %s3876_s3 = inlined_call_operand.vmem [shape: f32[2,256,8], index: 3, kind: output, shape index: {}]  }
   0x1   :  { %s2509_s14 = smov 0  }
   0x2 LB: > { %s25_s15 = sadd.s32 1, %s2470_s13  ;;  %p2170_p0 = scmp.ge.s32.totalorder %s2474_s14, 1  ;;  %s2474_s14 = sphi %s2509_s14, %s13_s14   ;;  %s2470_s13 = sphi %s2507_s13, %s3968_s13   ;;  %s2466_s12 = sphi %s2505_s12, %s3967_s12  }
   0x3   : > { %p27_p1 = scmp.ge.s32.totalorder %s25_s15, 2  ;;  %p151_p2 = scmp.lt.s32.totalorder %s2474_s14, 3 }
   0x5   : > { %s3970_s15 = smov (%p27_p1, %s25_s15), 0  ;;  %p152_p3 = pnand %p2170_p0, %p151_p2 }
   0x7   : > { %155 = sbr.rel (%p152_p3) target bundleno = 954 (0x3ba), region = 32 }
   0xc   : > { %p179_p4 = scmp.lt.s32.totalorder %s2466_s12, 1  ;;  %s2476_s20 = smov 4   ;;  %vm195_vm0 = vcmask 1047840   ;;  %vm262_vm1 = vcmask 31744   ;;  %v2477_v33 = vmov 0.0   ;;  %vm455_vm2 = vcmask 64544  }
   0xd   : > { %196 = vst.msk [vmem:[#allocation2] sm:$0xff] %vm195_vm0, %v2477_v33  ;;  %s2478_s21 = smov 8   ;;  %s2479_s22 = smov 12   ;;  %vm648_vm3 = vcmask 97344   ;;  %vm844_vm4 = vcmask 130144   ;;  %vm1037_vm5 = vcmask 162944  }
   0xe   : > { %s3972_s12 = smov (!%p179_p4, %s2466_s12), 1  ;;  %197 = vst.msk [vmem:[#allocation2 + $0x8] sm:$0xff] %vm195_vm0, %v2477_v33  ;;  %s2480_s23 = smov 16   ;;  %vm1230_vm6 = vcmask 195744   ;;  %vm1426_vm7 = vcmask 228544   ;;  %vm1619_vm8 = vcmask 261344  }
   0xf   : > { %s2417_s16 = smul.u32 432, %s3972_s12  ;;  %198 = vst.msk [vmem:[#allocation2 + $0x10] sm:$0xff] %vm195_vm0, %v2477_v33  ;;  %s2481_s24 = smov 20   ;;  %vm1812_vm9 = vcmask 294144   ;;  %vm2042_vm10 = vcmask 64512  }
  0x10   : > { %199 = vst.msk [vmem:[#allocation2 + $0x18] sm:$0xff] %vm195_vm0, %v2477_v33  ;;  %s2482_s25 = smov 24   ;;  %s2483_s26 = smov 28  }
  0x11   : > { %s2529_s19 = scalar_lea.vmem %s3873_s0, %s2417_s16  ;;  %200 = vst.msk [vmem:[#allocation2 + $0x20] sm:$0xff] %vm195_vm0, %v2477_v33  ;;  %s2484_s27 = smov 32  }
  0x12   : > { %v295_v0 = vld [vmem:[%s2529_s19 + $0x1] sm:$0xff]  ;;  %v2533_v1 = vld [vmem:[%s2529_s19 + $0x19] sm:$0xff]  ;;  %v2539_v2 = vld [vmem:[%s2529_s19 + $0x31] sm:$0xff]  ;;  %201 = vst.msk [vmem:[#allocation2 + $0x28] sm:$0xff] %vm195_vm0, %v2477_v33 }
  0x13   : > { %359 = vrot.lane.b32.xlu0 %v295_v0, %s2476_s20  ;;  %363 = vrot.lane.b32.xlu1 %v2533_v1, %s2476_s20  ;;  %v296_v3 = vld [vmem:[%s2529_s19 + $0x9] sm:$0xff]  ;;  %v2545_v4 = vld [vmem:[%s2529_s19 + $0x21] sm:$0xff]  ;;  %202 = vst.msk [vmem:[#allocation2 + $0x30] sm:$0xff] %vm195_vm0, %v2477_v33 }
  0x14   : > { %367 = vrot.lane.b32.xlu2 %v2539_v2, %s2476_s20  ;;  %v2551_v5 = vld [vmem:[%s2529_s19 + $0x39] sm:$0xff]  ;;  %v2556_v6 = vld [vmem:[%s2529_s19 + $0x49] sm:$0xff]  ;;  %v2559_v7 = vld [vmem:[%s2529_s19 + $0x51] sm:$0xff]  ;;  %203 = vst.msk [vmem:[#allocation2 + $0x38] sm:$0xff] %vm195_vm0, %v2477_v33 }
  0x15   : > { %v2566_v8 = vld [vmem:[%s2529_s19 + $0x61] sm:$0xff]  ;;  %v2571_v9 = vld [vmem:[%s2529_s19 + $0x69] sm:$0xff]  ;;  %v2574_v10 = vld [vmem:[%s2529_s19 + $0x79] sm:$0xff]  ;;  %204 = vst.msk [vmem:[#allocation2 + $0x40] sm:$0xff] %vm195_vm0, %v2477_v33 }
  0x16   : > { %v2581_v11 = vld [vmem:[%s2529_s19 + $0x81] sm:$0xff]  ;;  %v2586_v12 = vld [vmem:[%s2529_s19 + $0x91] sm:$0xff]  ;;  %v2589_v13 = vld [vmem:[%s2529_s19 + $0x99] sm:$0xff]  ;;  %205 = vst.msk [vmem:[#allocation2 + $0x48] sm:$0xff] %vm195_vm0, %v2477_v33 }
  0x17   : > { %v2596_v14 = vld [vmem:[%s2529_s19 + $0xa9] sm:$0xff]  ;;  %v2601_v15 = vld [vmem:[%s2529_s19 + $0xb1] sm:$0xff]  ;;  %v2604_v16 = vld [vmem:[%s2529_s19 + $0xc1] sm:$0xff]  ;;  %206 = vst.msk [vmem:[#allocation2 + $0x50] sm:$0xff] %vm195_vm0, %v2477_v33 }
  0x18   : > { %v2611_v17 = vld [vmem:[%s2529_s19 + $0xc9] sm:$0xff]  ;;  %v2616_v18 = vld [vmem:[%s2529_s19 + $0xd9] sm:$0xff]  ;;  %v2619_v19 = vld [vmem:[%s2529_s19 + $0xe1] sm:$0xff]  ;;  %207 = vst.msk [vmem:[#allocation2 + $0x58] sm:$0xff] %vm195_vm0, %v2477_v33 }
  0x19   : > { %v2626_v20 = vld [vmem:[%s2529_s19 + $0xf1] sm:$0xff]  ;;  %v2631_v21 = vld [vmem:[%s2529_s19 + $0xf9] sm:$0xff]  ;;  %v2634_v22 = vld [vmem:[%s2529_s19 + $0x109] sm:$0xff]  ;;  %208 = vst.msk [vmem:[#allocation2 + $0x60] sm:$0xff] %vm195_vm0, %v2477_v33 }
  0x1a   : > { %v2641_v23 = vld [vmem:[%s2529_s19 + $0x111] sm:$0xff]  ;;  %v2646_v24 = vld [vmem:[%s2529_s19 + $0x121] sm:$0xff]  ;;  %v2649_v25 = vld [vmem:[%s2529_s19 + $0x129] sm:$0xff]  ;;  %209 = vst.msk [vmem:[#allocation2 + $0x68] sm:$0xff] %vm195_vm0, %v2477_v33 }
  0x1b   : > { %361 = vrot.lane.b32.xlu0 %v296_v3, %s2476_s20  ;;  %365 = vrot.lane.b32.xlu1 %v2545_v4, %s2476_s20  ;;  %v2656_v26 = vld [vmem:[%s2529_s19 + $0x139] sm:$0xff]  ;;  %v2661_v27 = vld [vmem:[%s2529_s19 + $0x141] sm:$0xff]  ;;  %210 = vst.msk [vmem:[#allocation2 + $0x70] sm:$0xff] %vm195_vm0, %v2477_v33 }
  0x1c   : > { %369 = vrot.lane.b32.xlu2 %v2551_v5, %s2476_s20  ;;  %v2664_v28 = vld [vmem:[%s2529_s19 + $0x151] sm:$0xff]  ;;  %v2671_v29 = vld [vmem:[%s2529_s19 + $0x159] sm:$0xff]  ;;  %v2676_v30 = vld [vmem:[%s2529_s19 + $0x169] sm:$0xff]  ;;  %211 = vst.msk [vmem:[#allocation2 + $0x78] sm:$0xff] %vm195_vm0, %v2477_v33 }
  0x1d   : > { %v2679_v31 = vld [vmem:[%s2529_s19 + $0x171] sm:$0xff]  ;;  %v488_v32 = vld [vmem:[%s2529_s19 + $0x2] sm:$0xff]  ;;  %v2697_v36 = vld [vmem:[%s2529_s19 + $0x1a] sm:$0xff]  ;;  %212 = vst.msk [vmem:[#allocation2 + $0x80] sm:$0xff] %vm195_vm0, %v2477_v33 }
  0x1e   : > { %v230_v34 = vld [vmem:[%s2529_s19] sm:$0xff]  ;;  %v489_v35 = vld [vmem:[%s2529_s19 + $0xa] sm:$0xff]  ;;  %3907 = vst [vmem:[#allocation3_spill] sm:$0xff] %v2697_v36  ;;  %v2724_v38 = vld [vmem:[%s2529_s19 + $0x32] sm:$0xff] }
  0x1f   : > { %263 = vst.msk [vmem:[#allocation2] sm:$0xff] %vm262_vm1, %v230_v34  ;;  %v2711_v37 = vld [vmem:[%s2529_s19 + $0x22] sm:$0xff]  ;;  %v2727_v39 = vld [vmem:[%s2529_s19 + $0x3a] sm:$0xff]  ;;  %v2742_v41 = vld [vmem:[%s2529_s19 + $0x4a] sm:$0xff] }
  0x20   : > { %3908 = vst [vmem:[#allocation4_spill] sm:$0xff] %v2711_v37  ;;  %v2755_v42 = vld [vmem:[%s2529_s19 + $0x52] sm:$0xff]  ;;  %v2758_v43 = vld [vmem:[%s2529_s19 + $0x62] sm:$0xff]  ;;  %v2773_v45 = vld [vmem:[%s2529_s19 + $0x6a] sm:$0xff] }
  0x21   : > { %3909 = vst [vmem:[#allocation5_spill] sm:$0xff] %v2724_v38  ;;  %v2786_v46 = vld [vmem:[%s2529_s19 + $0x7a] sm:$0xff]  ;;  %v2791_v47 = vld [vmem:[%s2529_s19 + $0x82] sm:$0xff]  ;;  %v2807_v50 = vld [vmem:[%s2529_s19 + $0x92] sm:$0xff] }
  0x22   : > { %3910 = vst [vmem:[#allocation6_spill] sm:$0xff] %v2727_v39  ;;  %v2798_v49 = vld [vmem:[%s2529_s19 + $0x18] sm:$0xff]  ;;  %v2814_v53 = vld [vmem:[%s2529_s19 + $0x30] sm:$0xff]  ;;  %v231_v54 = vld [vmem:[%s2529_s19 + $0x8] sm:$0xff] }
  0x23   : > { %371 = vrot.lane.b32.xlu0 %v2556_v6, %s2476_s20  ;;  %373 = vrot.lane.b32.xlu1 %v2559_v7, %s2476_s20  ;;  %3911 = vst [vmem:[#allocation7_spill] sm:$0xff] %v2742_v41  ;;  %v2822_v55 = vld [vmem:[%s2529_s19 + $0x9a] sm:$0xff]  ;;  %v2827_v56 = vld [vmem:[%s2529_s19 + $0xaa] sm:$0xff] }
  0x24   : > { %375 = vrot.lane.b32.xlu2 %v2566_v8, %s2476_s20  ;;  %213 = vst.msk [vmem:[#allocation2 + $0x88] sm:$0xff] %vm195_vm0, %v2477_v33  ;;  %v2830_v57 = vld [vmem:[%s2529_s19 + $0x20] sm:$0xff]  ;;  %v2834_v59 = vld [vmem:[%s2529_s19 + $0x38] sm:$0xff]  ;;  %v2850_v63 = vld [vmem:[%s2529_s19 + $0x48] sm:$0xff] }
  0x25   : > { %214 = vst.msk [vmem:[#allocation2 + $0x90] sm:$0xff] %vm195_vm0, %v2477_v33  ;;  %v2844_v60 = vld [vmem:[%s2529_s19 + $0xb2] sm:$0xff]  ;;  %v2860_v3 = vld [vmem:[%s2529_s19 + $0x60] sm:$0xff] }
  0x26   : > { %3912 = vst [vmem:[#allocation8_spill] sm:$0xff] %v2755_v42  ;;  %v2854_v0 = vld [vmem:[%s2529_s19 + $0x50] sm:$0xff] }
  0x27   : > { %3913 = vst [vmem:[#allocation9_spill] sm:$0xff] %v2758_v43 }
  0x28   : > { %215 = vst.msk [vmem:[#allocation2 + $0x98] sm:$0xff] %vm195_vm0, %v2477_v33 }
  0x29   : > { %216 = vst.msk [vmem:[#allocation2 + $0xa0] sm:$0xff] %vm195_vm0, %v2477_v33 }
  0x2a   : > { %217 = vst.msk [vmem:[#allocation2 + $0xa8] sm:$0xff] %vm195_vm0, %v2477_v33 }
  0x2b   : > { %377 = vrot.lane.b32.xlu0 %v2571_v9, %s2476_s20  ;;  %379 = vrot.lane.b32.xlu1 %v2574_v10, %s2476_s20  ;;  %218 = vst.msk [vmem:[#allocation2 + $0xb0] sm:$0xff] %vm195_vm0, %v2477_v33 }
  0x2c   : > { %381 = vrot.lane.b32.xlu2 %v2581_v11, %s2476_s20  ;;  %3914 = vst [vmem:[#allocation10_spill] sm:$0xff] %v2773_v45 }
  0x2d   : > { %219 = vst.msk [vmem:[#allocation2 + $0xb8] sm:$0xff] %vm195_vm0, %v2477_v33 }
  0x2e   : > { %220 = vst.msk [vmem:[#allocation2 + $0xc0] sm:$0xff] %vm195_vm0, %v2477_v33 }
  0x2f   : > { %221 = vst.msk [vmem:[#allocation2 + $0xc8] sm:$0xff] %vm195_vm0, %v2477_v33 }
  0x30   : > { %222 = vst.msk [vmem:[#allocation2 + $0xd0] sm:$0xff] %vm195_vm0, %v2477_v33 }
  0x31   : > { %3915 = vst [vmem:[#allocation11_spill] sm:$0xff] %v2786_v46 }
  0x32   : > { %223 = vst.msk [vmem:[#allocation2 + $0xd8] sm:$0xff] %vm195_vm0, %v2477_v33 }
  0x33   : > { %383 = vrot.lane.b32.xlu0 %v2586_v12, %s2476_s20  ;;  %385 = vrot.lane.b32.xlu1 %v2589_v13, %s2476_s20  ;;  %3916 = vst [vmem:[#allocation12_spill] sm:$0xff] %v2791_v47 }
  0x34   : > { %387 = vrot.lane.b32.xlu2 %v2596_v14, %s2476_s20  ;;  %224 = vst.msk [vmem:[#allocation2 + $0xe0] sm:$0xff] %vm195_vm0, %v2477_v33 }
  0x35   : > { %225 = vst.msk [vmem:[#allocation2 + $0xe8] sm:$0xff] %vm195_vm0, %v2477_v33 }
  0x36   : > { %226 = vst.msk [vmem:[#allocation2 + $0xf0] sm:$0xff] %vm195_vm0, %v2477_v33 }
  0x37   : > { %3917 = vst [vmem:[#allocation13_spill] sm:$0xff] %v2807_v50 }
  0x38   : > { %227 = vst.msk [vmem:[#allocation2 + $0xf8] sm:$0xff] %vm195_vm0, %v2477_v33  ;;  %v2868_v33 = vld [vmem:[%s2529_s19 + $0xca] sm:$0xff] }
  0x39   : > { %265 = vst.msk [vmem:[#allocation2 + $0x10] sm:$0xff] %vm262_vm1, %v2798_v49 }
  0x3a   : > { %3918 = vst [vmem:[#allocation14_spill] sm:$0xff] %v2822_v55 }
  0x3b   : > { %389 = vrot.lane.b32.xlu0 %v2601_v15, %s2476_s20  ;;  %391 = vrot.lane.b32.xlu1 %v2604_v16, %s2476_s20  ;;  %267 = vst.msk [vmem:[#allocation2 + $0x20] sm:$0xff] %vm262_vm1, %v2814_v53 }
  0x3c   : > { %393 = vrot.lane.b32.xlu2 %v2611_v17, %s2476_s20  ;;  %3919 = vst [vmem:[#allocation15_spill] sm:$0xff] %v2827_v56 }
  0x3d   : > { %264 = vst.msk [vmem:[#allocation2 + $0x8] sm:$0xff] %vm262_vm1, %v231_v54  ;;  %v2893_v54 = vld [vmem:[%s2529_s19 + $0x80] sm:$0xff] }
  0x3e   : > { %266 = vst.msk [vmem:[#allocation2 + $0x18] sm:$0xff] %vm262_vm1, %v2830_v57 }
  0x3f   : > { %3920 = vst [vmem:[#allocation16_spill] sm:$0xff] %v2844_v60 }
  0x40   : > { %268 = vst.msk [vmem:[#allocation2 + $0x28] sm:$0xff] %vm262_vm1, %v2834_v59 }
  0x41   : > { %269 = vst.msk [vmem:[#allocation2 + $0x30] sm:$0xff] %vm262_vm1, %v2850_v63 }
  0x42   : > { %3922 = vst [vmem:[#allocation18_spill] sm:$0xff] %v2868_v33 }
  0x43   : > { %395 = vrot.lane.b32.xlu0 %v2616_v18, %s2476_s20  ;;  %397 = vrot.lane.b32.xlu1 %v2619_v19, %s2476_s20  ;;  %270 = vst.msk [vmem:[#allocation2 + $0x38] sm:$0xff] %vm262_vm1, %v2854_v0 }
  0x44   : > { %399 = vrot.lane.b32.xlu2 %v2626_v20, %s2476_s20  ;;  %271 = vst.msk [vmem:[#allocation2 + $0x40] sm:$0xff] %vm262_vm1, %v2860_v3 }
  0x45   : > { %274 = vst.msk [vmem:[#allocation2 + $0x58] sm:$0xff] %vm262_vm1, %v2893_v54 }
  0x4b   : > { %401 = vrot.lane.b32.xlu0 %v2631_v21, %s2476_s20  ;;  %403 = vrot.lane.b32.xlu1 %v2634_v22, %s2476_s20 }
  0x4c   : > { %405 = vrot.lane.b32.xlu2 %v2641_v23, %s2476_s20 }
  0x53   : > { %407 = vrot.lane.b32.xlu0 %v2646_v24, %s2476_s20  ;;  %409 = vrot.lane.b32.xlu1 %v2649_v25, %s2476_s20 }
  0x54   : > { %411 = vrot.lane.b32.xlu2 %v2656_v26, %s2476_s20 }
  0x5b   : > { %413 = vrot.lane.b32.xlu0 %v2661_v27, %s2476_s20  ;;  %415 = vrot.lane.b32.xlu1 %v2664_v28, %s2476_s20 }
  0x5c   : > { %417 = vrot.lane.b32.xlu2 %v2671_v29, %s2476_s20 }
  0x63   : > { %419 = vrot.lane.b32.xlu0 %v2676_v30, %s2476_s20  ;;  %421 = vrot.lane.b32.xlu1 %v2679_v31, %s2476_s20 }
  0x64   : > { %552 = vrot.lane.b32.xlu2 %v488_v32, %s2478_s21  ;;  %v2863_v32 = vld [vmem:[%s2529_s19 + $0xc2] sm:$0xff] }
  0x65   : > { %3921 = vst [vmem:[#allocation17_spill] sm:$0xff] %v2863_v32 }
  0x6b   : > { %554 = vrot.lane.b32.xlu0 %v489_v35, %s2478_s21  ;;  %556 = vrot.lane.b32.xlu1 %v2697_v36, %s2478_s21  ;;  %v2873_v35 = vld [vmem:[%s2529_s19 + $0x68] sm:$0xff]  ;;  %v3057_v36 = vld [vmem:[%s2529_s19 + $0x158] sm:$0xff] }
  0x6c   : > { %558 = vrot.lane.b32.xlu2 %v2711_v37, %s2478_s21  ;;  %272 = vst.msk [vmem:[#allocation2 + $0x48] sm:$0xff] %vm262_vm1, %v2873_v35 }
  0x6d   : > { %292 = vst.msk [vmem:[#allocation2 + $0xe8] sm:$0xff] %vm262_vm1, %v3057_v36 }
  0x6e   : > { %v368_v40 = vpop.permute.xlu2 %367 }
  0x6f   : > { %460 = vst.msk [vmem:[#allocation2 + $0x20] sm:$0xff] %vm455_vm2, %v368_v40  ;;  %v2878_v40 = vld [vmem:[%s2529_s19 + $0x78] sm:$0xff] }
  0x70   : > { %273 = vst.msk [vmem:[#allocation2 + $0x50] sm:$0xff] %vm262_vm1, %v2878_v40 }
  0x73   : > { %560 = vrot.lane.b32.xlu0 %v2724_v38, %s2478_s21  ;;  %562 = vrot.lane.b32.xlu1 %v2727_v39, %s2478_s21  ;;  %v3030_v39 = vld [vmem:[%s2529_s19 + $0x15a] sm:$0xff] }
  0x74   : > { %564 = vrot.lane.b32.xlu2 %v2742_v41, %s2478_s21  ;;  %v3027_v41 = vld [vmem:[%s2529_s19 + $0x152] sm:$0xff]  ;;  %3934 = vst [vmem:[#allocation30_spill] sm:$0xff] %v3030_v39 }
  0x75   : > { %3933 = vst [vmem:[#allocation29_spill] sm:$0xff] %v3027_v41 }
  0x76   : > { %v370_v44 = vpop.permute.xlu2 %369 }
  0x77   : > { %461 = vst.msk [vmem:[#allocation2 + $0x28] sm:$0xff] %vm455_vm2, %v370_v44  ;;  %v2886_v44 = vld [vmem:[%s2529_s19 + $0xda] sm:$0xff] }
  0x78   : > { %3923 = vst [vmem:[#allocation19_spill] sm:$0xff] %v2886_v44 }
  0x7b   : > { %566 = vrot.lane.b32.xlu0 %v2755_v42, %s2478_s21  ;;  %568 = vrot.lane.b32.xlu1 %v2758_v43, %s2478_s21  ;;  %v3014_v42 = vld [vmem:[%s2529_s19 + $0x120] sm:$0xff] }
  0x7c   : > { %570 = vrot.lane.b32.xlu2 %v2773_v45, %s2478_s21  ;;  %v2993_v45 = vld [vmem:[%s2529_s19 + $0x108] sm:$0xff]  ;;  %287 = vst.msk [vmem:[#allocation2 + $0xc0] sm:$0xff] %vm262_vm1, %v3014_v42 }
  0x7d   : > { %285 = vst.msk [vmem:[#allocation2 + $0xb0] sm:$0xff] %vm262_vm1, %v2993_v45 }
  0x7e   : > { %v376_v48 = vpop.permute.xlu2 %375 }
  0x7f   : > { %464 = vst.msk [vmem:[#allocation2 + $0x40] sm:$0xff] %vm455_vm2, %v376_v48  ;;  %v2900_v48 = vld [vmem:[%s2529_s19 + $0x90] sm:$0xff] }
  0x80   : > { %275 = vst.msk [vmem:[#allocation2 + $0x60] sm:$0xff] %vm262_vm1, %v2900_v48 }
  0x83   : > { %572 = vrot.lane.b32.xlu0 %v2786_v46, %s2478_s21  ;;  %574 = vrot.lane.b32.xlu1 %v2791_v47, %s2478_s21  ;;  %v2975_v46 = vld [vmem:[%s2529_s19 + $0xf0] sm:$0xff] }
  0x84   : > { %576 = vrot.lane.b32.xlu2 %v2807_v50, %s2478_s21  ;;  %283 = vst.msk [vmem:[#allocation2 + $0xa0] sm:$0xff] %vm262_vm1, %v2975_v46 }
  0x85   : > { %v360_v51 = vpop.permute.xlu0 %359  ;;  %v364_v52 = vpop.permute.xlu1 %363 }
  0x86   : > { %456 = vst.msk [vmem:[#allocation2] sm:$0xff] %vm455_vm2, %v360_v51  ;;  %v382_v58 = vpop.permute.xlu2 %381 }
  0x87   : > { %458 = vst.msk [vmem:[#allocation2 + $0x10] sm:$0xff] %vm455_vm2, %v364_v52 }
  0x88   : > { %467 = vst.msk [vmem:[#allocation2 + $0x58] sm:$0xff] %vm455_vm2, %v382_v58 }
  0x8b   : > { %578 = vrot.lane.b32.xlu0 %v2822_v55, %s2478_s21  ;;  %580 = vrot.lane.b32.xlu1 %v2827_v56, %s2478_s21  ;;  %v2945_v56 = vld [vmem:[%s2529_s19 + $0x10a] sm:$0xff]  ;;  %v2948_v55 = vld [vmem:[%s2529_s19 + $0x112] sm:$0xff] }
  0x8c   : > { %582 = vrot.lane.b32.xlu2 %v2844_v60, %s2478_s21  ;;  %v2932_v60 = vld [vmem:[%s2529_s19 + $0xb0] sm:$0xff]  ;;  %3927 = vst [vmem:[#allocation23_spill] sm:$0xff] %v2945_v56 }
  0x8d   : > { %v362_v61 = vpop.permute.xlu0 %361  ;;  %v366_v62 = vpop.permute.xlu1 %365  ;;  %3928 = vst [vmem:[#allocation24_spill] sm:$0xff] %v2948_v55 }
  0x8e   : > { %457 = vst.msk [vmem:[#allocation2 + $0x8] sm:$0xff] %vm455_vm2, %v362_v61  ;;  %v388_v34 = vpop.permute.xlu2 %387  ;;  %v2903_v61 = vld [vmem:[%s2529_s19 + $0xe2] sm:$0xff] }
  0x8f   : > { %459 = vst.msk [vmem:[#allocation2 + $0x18] sm:$0xff] %vm455_vm2, %v366_v62  ;;  %v2906_v62 = vld [vmem:[%s2529_s19 + $0xf2] sm:$0xff] }
  0x90   : > { %3924 = vst [vmem:[#allocation20_spill] sm:$0xff] %v2903_v61 }
  0x91   : > { %3925 = vst [vmem:[#allocation21_spill] sm:$0xff] %v2906_v62 }
  0x92   : > { %278 = vst.msk [vmem:[#allocation2 + $0x78] sm:$0xff] %vm262_vm1, %v2932_v60 }
  0x93   : > { %584 = vrot.lane.b32.xlu0 %v2863_v32, %s2478_s21  ;;  %586 = vrot.lane.b32.xlu1 %v2868_v33, %s2478_s21  ;;  %v2911_v33 = vld [vmem:[%s2529_s19 + $0x98] sm:$0xff] }
  0x94   : > { %588 = vrot.lane.b32.xlu2 %v2886_v44, %s2478_s21  ;;  %276 = vst.msk [vmem:[#allocation2 + $0x68] sm:$0xff] %vm262_vm1, %v2911_v33 }
  0x95   : > { %v372_v51 = vpop.permute.xlu0 %371  ;;  %v374_v52 = vpop.permute.xlu1 %373 }
  0x96   : > { %462 = vst.msk [vmem:[#allocation2 + $0x30] sm:$0xff] %vm455_vm2, %v372_v51  ;;  %v394_v32 = vpop.permute.xlu2 %393  ;;  %v2915_v51 = vld [vmem:[%s2529_s19 + $0xa8] sm:$0xff] }
  0x97   : > { %463 = vst.msk [vmem:[#allocation2 + $0x38] sm:$0xff] %vm455_vm2, %v374_v52  ;;  %v2926_v52 = vld [vmem:[%s2529_s19 + $0xfa] sm:$0xff] }
  0x98   : > { %3926 = vst [vmem:[#allocation22_spill] sm:$0xff] %v2926_v52 }
  0x99   : > { %277 = vst.msk [vmem:[#allocation2 + $0x70] sm:$0xff] %vm262_vm1, %v2915_v51 }
  0x9a   : > { %470 = vst.msk [vmem:[#allocation2 + $0x70] sm:$0xff] %vm455_vm2, %v388_v34 }
  0x9b   : > { %590 = vrot.lane.b32.xlu0 %v2903_v61, %s2478_s21  ;;  %592 = vrot.lane.b32.xlu1 %v2906_v62, %s2478_s21  ;;  %v2936_v62 = vld [vmem:[%s2529_s19 + $0xc0] sm:$0xff]  ;;  %v2942_v61 = vld [vmem:[%s2529_s19 + $0xc8] sm:$0xff] }
  0x9c   : > { %594 = vrot.lane.b32.xlu2 %v2926_v52, %s2478_s21  ;;  %279 = vst.msk [vmem:[#allocation2 + $0x80] sm:$0xff] %vm262_vm1, %v2936_v62  ;;  %v2968_v52 = vld [vmem:[%s2529_s19 + $0x122] sm:$0xff] }
  0x9d   : > { %v378_v58 = vpop.permute.xlu0 %377  ;;  %v380_v44 = vpop.permute.xlu1 %379  ;;  %280 = vst.msk [vmem:[#allocation2 + $0x88] sm:$0xff] %vm262_vm1, %v2942_v61 }
  0x9e   : > { %465 = vst.msk [vmem:[#allocation2 + $0x48] sm:$0xff] %vm455_vm2, %v378_v58  ;;  %v400_v34 = vpop.permute.xlu2 %399  ;;  %v2955_v58 = vld [vmem:[%s2529_s19 + $0xd8] sm:$0xff] }
  0x9f   : > { %466 = vst.msk [vmem:[#allocation2 + $0x50] sm:$0xff] %vm455_vm2, %v380_v44  ;;  %v2960_v44 = vld [vmem:[%s2529_s19 + $0xe0] sm:$0xff] }
  0xa0   : > { %473 = vst.msk [vmem:[#allocation2 + $0x88] sm:$0xff] %vm455_vm2, %v394_v32  ;;  %v2982_v32 = vld [vmem:[%s2529_s19 + $0xf8] sm:$0xff] }
  0xa1   : > { %3929 = vst [vmem:[#allocation25_spill] sm:$0xff] %v2968_v52 }
  0xa2   : > { %281 = vst.msk [vmem:[#allocation2 + $0x90] sm:$0xff] %vm262_vm1, %v2955_v58 }
  0xa3   : > { %596 = vrot.lane.b32.xlu0 %v2945_v56, %s2478_s21  ;;  %598 = vrot.lane.b32.xlu1 %v2948_v55, %s2478_s21  ;;  %282 = vst.msk [vmem:[#allocation2 + $0x98] sm:$0xff] %vm262_vm1, %v2960_v44  ;;  %v2985_v55 = vld [vmem:[%s2529_s19 + $0x12a] sm:$0xff]  ;;  %v2988_v56 = vld [vmem:[%s2529_s19 + $0x13a] sm:$0xff] }
  0xa4   : > { %600 = vrot.lane.b32.xlu2 %v2968_v52, %s2478_s21  ;;  %3930 = vst [vmem:[#allocation26_spill] sm:$0xff] %v2985_v55 }
  0xa5   : > { %v384_v50 = vpop.permute.xlu0 %383  ;;  %v386_v47 = vpop.permute.xlu1 %385  ;;  %3931 = vst [vmem:[#allocation27_spill] sm:$0xff] %v2988_v56 }
  0xa6   : > { %468 = vst.msk [vmem:[#allocation2 + $0x60] sm:$0xff] %vm455_vm2, %v384_v50  ;;  %v406_v43 = vpop.permute.xlu2 %405  ;;  %v2997_v50 = vld [vmem:[%s2529_s19 + $0x110] sm:$0xff] }
  0xa7   : > { %469 = vst.msk [vmem:[#allocation2 + $0x68] sm:$0xff] %vm455_vm2, %v386_v47  ;;  %v3008_v47 = vld [vmem:[%s2529_s19 + $0x142] sm:$0xff] }
  0xa8   : > { %476 = vst.msk [vmem:[#allocation2 + $0xa0] sm:$0xff] %vm455_vm2, %v400_v34 }
  0xa9   : > { %284 = vst.msk [vmem:[#allocation2 + $0xa8] sm:$0xff] %vm262_vm1, %v2982_v32 }
  0xaa   : > { %3932 = vst [vmem:[#allocation28_spill] sm:$0xff] %v3008_v47 }
  0xab   : > { %602 = vrot.lane.b32.xlu0 %v2985_v55, %s2478_s21  ;;  %604 = vrot.lane.b32.xlu1 %v2988_v56, %s2478_s21  ;;  %286 = vst.msk [vmem:[#allocation2 + $0xb8] sm:$0xff] %vm262_vm1, %v2997_v50  ;;  %v3020_v56 = vld [vmem:[%s2529_s19 + $0x128] sm:$0xff]  ;;  %v3024_v55 = vld [vmem:[%s2529_s19 + $0x138] sm:$0xff] }
  0xac   : > { %479 = vst.msk [vmem:[#allocation2 + $0xb8] sm:$0xff] %vm455_vm2, %v406_v43  ;;  %606 = vrot.lane.b32.xlu2 %v3008_v47, %s2478_s21  ;;  %v3050_v47 = vld [vmem:[%s2529_s19 + $0x150] sm:$0xff] }
  0xad   : > { %v390_v34 = vpop.permute.xlu0 %389  ;;  %v392_v52 = vpop.permute.xlu1 %391  ;;  %288 = vst.msk [vmem:[#allocation2 + $0xc8] sm:$0xff] %vm262_vm1, %v3020_v56 }
  0xae   : > { %471 = vst.msk [vmem:[#allocation2 + $0x78] sm:$0xff] %vm455_vm2, %v390_v34  ;;  %v412_v43 = vpop.permute.xlu2 %411  ;;  %v3037_v34 = vld [vmem:[%s2529_s19 + $0x140] sm:$0xff] }
  0xaf   : > { %472 = vst.msk [vmem:[#allocation2 + $0x80] sm:$0xff] %vm455_vm2, %v392_v52  ;;  %v3047_v52 = vld [vmem:[%s2529_s19 + $0x16a] sm:$0xff] }
  0xb0   : > { %289 = vst.msk [vmem:[#allocation2 + $0xd0] sm:$0xff] %vm262_vm1, %v3024_v55 }
  0xb1   : > { %482 = vst.msk [vmem:[#allocation2 + $0xd0] sm:$0xff] %vm455_vm2, %v412_v43  ;;  %v3064_v43 = vld [vmem:[%s2529_s19 + $0x168] sm:$0xff] }
  0xb2   : > { %3935 = vst [vmem:[#allocation31_spill] sm:$0xff] %v3047_v52 }
  0xb3   : > { %608 = vrot.lane.b32.xlu0 %v3027_v41, %s2478_s21  ;;  %610 = vrot.lane.b32.xlu1 %v3030_v39, %s2478_s21  ;;  %290 = vst.msk [vmem:[#allocation2 + $0xd8] sm:$0xff] %vm262_vm1, %v3037_v34  ;;  %v3067_v39 = vld [vmem:[%s2529_s19 + $0x172] sm:$0xff] }
  0xb4   : > { %291 = vst.msk [vmem:[#allocation2 + $0xe0] sm:$0xff] %vm262_vm1, %v3050_v47  ;;  %612 = vrot.lane.b32.xlu2 %v3047_v52, %s2478_s21 }
  0xb5   : > { %v396_v38 = vpop.permute.xlu0 %395  ;;  %v398_v37 = vpop.permute.xlu1 %397  ;;  %3936 = vst [vmem:[#allocation32_spill] sm:$0xff] %v3067_v39 }
  0xb6   : > { %474 = vst.msk [vmem:[#allocation2 + $0x90] sm:$0xff] %vm455_vm2, %v396_v38  ;;  %v418_v41 = vpop.permute.xlu2 %417 }
  0xb7   : > { %475 = vst.msk [vmem:[#allocation2 + $0x98] sm:$0xff] %vm455_vm2, %v398_v37  ;;  %v3079_v37 = vld [vmem:[%s2529_s19 + $0x170] sm:$0xff] }
  0xb8   : > { %485 = vst.msk [vmem:[#allocation2 + $0xe8] sm:$0xff] %vm455_vm2, %v418_v41 }
  0xb9   : > { %293 = vst.msk [vmem:[#allocation2 + $0xf0] sm:$0xff] %vm262_vm1, %v3064_v43 }
  0xba   : > { %294 = vst.msk [vmem:[#allocation2 + $0xf8] sm:$0xff] %vm262_vm1, %v3079_v37 }
  0xbb   : > { %614 = vrot.lane.b32.xlu0 %v3067_v39, %s2478_s21  ;;  %748 = vrot.lane.b32.xlu1 %v2798_v49, %s2479_s22 }
  0xbc   : > { %750 = vrot.lane.b32.xlu2 %v2830_v57, %s2479_s22 }
  0xbd   : > { %v402_v38 = vpop.permute.xlu0 %401  ;;  %v404_v52 = vpop.permute.xlu1 %403 }
  0xbe   : > { %477 = vst.msk [vmem:[#allocation2 + $0xa8] sm:$0xff] %vm455_vm2, %v402_v38  ;;  %v553_v41 = vpop.permute.xlu2 %552 }
  0xbf   : > { %478 = vst.msk [vmem:[#allocation2 + $0xb0] sm:$0xff] %vm455_vm2, %v404_v52 }
  0xc0   : > { %649 = vst.msk [vmem:[#allocation2] sm:$0xff] %vm648_vm3, %v553_v41 }
  0xc3   : > { %752 = vrot.lane.b32.xlu0 %v2814_v53, %s2479_s22  ;;  %754 = vrot.lane.b32.xlu1 %v2834_v59, %s2479_s22 }
  0xc4   : > { %756 = vrot.lane.b32.xlu2 %v2850_v63, %s2479_s22 }
  0xc5   : > { %v408_v49 = vpop.permute.xlu0 %407  ;;  %v410_v39 = vpop.permute.xlu1 %409 }
  0xc6   : > { %480 = vst.msk [vmem:[#allocation2 + $0xc0] sm:$0xff] %vm455_vm2, %v408_v49  ;;  %v559_v57 = vpop.permute.xlu2 %558 }
  0xc7   : > { %481 = vst.msk [vmem:[#allocation2 + $0xc8] sm:$0xff] %vm455_vm2, %v410_v39 }
  0xc8   : > { %652 = vst.msk [vmem:[#allocation2 + $0x18] sm:$0xff] %vm648_vm3, %v559_v57 }
  0xcb   : > { %758 = vrot.lane.b32.xlu0 %v2854_v0, %s2479_s22  ;;  %760 = vrot.lane.b32.xlu1 %v2860_v3, %s2479_s22 }
  0xcc   : > { %762 = vrot.lane.b32.xlu2 %v2873_v35, %s2479_s22 }
  0xcd   : > { %v414_v53 = vpop.permute.xlu0 %413  ;;  %v416_v59 = vpop.permute.xlu1 %415 }
  0xce   : > { %483 = vst.msk [vmem:[#allocation2 + $0xd8] sm:$0xff] %vm455_vm2, %v414_v53  ;;  %v565_v52 = vpop.permute.xlu2 %564 }
  0xcf   : > { %484 = vst.msk [vmem:[#allocation2 + $0xe0] sm:$0xff] %vm455_vm2, %v416_v59 }
  0xd0   : > { %655 = vst.msk [vmem:[#allocation2 + $0x30] sm:$0xff] %vm648_vm3, %v565_v52 }
  0xd3   : > { %764 = vrot.lane.b32.xlu0 %v2878_v40, %s2479_s22  ;;  %766 = vrot.lane.b32.xlu1 %v2893_v54, %s2479_s22 }
  0xd4   : > { %768 = vrot.lane.b32.xlu2 %v2900_v48, %s2479_s22 }
  0xd5   : > { %v420_v39 = vpop.permute.xlu0 %419  ;;  %v422_v3 = vpop.permute.xlu1 %421 }
  0xd6   : > { %486 = vst.msk [vmem:[#allocation2 + $0xf0] sm:$0xff] %vm455_vm2, %v420_v39  ;;  %v571_v38 = vpop.permute.xlu2 %570 }
  0xd7   : > { %487 = vst.msk [vmem:[#allocation2 + $0xf8] sm:$0xff] %vm455_vm2, %v422_v3 }
  0xd8   : > { %658 = vst.msk [vmem:[#allocation2 + $0x48] sm:$0xff] %vm648_vm3, %v571_v38  ;;  %v2205_v38 = vld [vmem:[%s2529_s19 + $0x188] sm:$0xff] }
  0xdb   : > { %770 = vrot.lane.b32.xlu0 %v2911_v33, %s2479_s22  ;;  %772 = vrot.lane.b32.xlu1 %v2915_v51, %s2479_s22 }
  0xdc   : > { %774 = vrot.lane.b32.xlu2 %v2932_v60, %s2479_s22 }
  0xdd   : > { %v555_v41 = vpop.permute.xlu0 %554  ;;  %v557_v54 = vpop.permute.xlu1 %556 }
  0xde   : > { %650 = vst.msk [vmem:[#allocation2 + $0x8] sm:$0xff] %vm648_vm3, %v555_v41  ;;  %v577_v49 = vpop.permute.xlu2 %576 }
  0xdf   : > { %651 = vst.msk [vmem:[#allocation2 + $0x10] sm:$0xff] %vm648_vm3, %v557_v54 }
  0xe0   : > { %661 = vst.msk [vmem:[#allocation2 + $0x60] sm:$0xff] %vm648_vm3, %v577_v49 }
  0xe3   : > { %776 = vrot.lane.b32.xlu0 %v2936_v62, %s2479_s22  ;;  %778 = vrot.lane.b32.xlu1 %v2942_v61, %s2479_s22 }
  0xe4   : > { %780 = vrot.lane.b32.xlu2 %v2955_v58, %s2479_s22 }
  0xe5   : > { %v561_v57 = vpop.permute.xlu0 %560  ;;  %v563_v51 = vpop.permute.xlu1 %562 }
  0xe6   : > { %653 = vst.msk [vmem:[#allocation2 + $0x20] sm:$0xff] %vm648_vm3, %v561_v57  ;;  %v583_v53 = vpop.permute.xlu2 %582 }
  0xe7   : > { %654 = vst.msk [vmem:[#allocation2 + $0x28] sm:$0xff] %vm648_vm3, %v563_v51 }
  0xe8   : > { %664 = vst.msk [vmem:[#allocation2 + $0x78] sm:$0xff] %vm648_vm3, %v583_v53  ;;  %v3271_v53 = vld [vmem:[%s2529_s19 + $0x189] sm:$0xff] }
  0xeb   : > { %782 = vrot.lane.b32.xlu0 %v2960_v44, %s2479_s22  ;;  %784 = vrot.lane.b32.xlu1 %v2975_v46, %s2479_s22 }
  0xec   : > { %786 = vrot.lane.b32.xlu2 %v2982_v32, %s2479_s22 }
  0xed   : > { %v567_v59 = vpop.permute.xlu0 %566  ;;  %v569_v61 = vpop.permute.xlu1 %568 }
  0xee   : > { %656 = vst.msk [vmem:[#allocation2 + $0x38] sm:$0xff] %vm648_vm3, %v567_v59  ;;  %v589_v52 = vpop.permute.xlu2 %588 }
  0xef   : > { %657 = vst.msk [vmem:[#allocation2 + $0x40] sm:$0xff] %vm648_vm3, %v569_v61 }
  0xf0   : > { %667 = vst.msk [vmem:[#allocation2 + $0x90] sm:$0xff] %vm648_vm3, %v589_v52  ;;  %v3938_v52 = vld [vmem:[#allocation4_spill] sm:$0xff] }
  0xf3   : > { %788 = vrot.lane.b32.xlu0 %v2993_v45, %s2479_s22  ;;  %790 = vrot.lane.b32.xlu1 %v2997_v50, %s2479_s22 }
  0xf4   : > { %792 = vrot.lane.b32.xlu2 %v3014_v42, %s2479_s22 }
  0xf5   : > { %v573_v39 = vpop.permute.xlu0 %572  ;;  %v575_v46 = vpop.permute.xlu1 %574 }
  0xf6   : > { %659 = vst.msk [vmem:[#allocation2 + $0x50] sm:$0xff] %vm648_vm3, %v573_v39  ;;  %v595_v32 = vpop.permute.xlu2 %594  ;;  %v3939_v39 = vld [vmem:[#allocation5_spill] sm:$0xff] }
  0xf7   : > { %660 = vst.msk [vmem:[#allocation2 + $0x58] sm:$0xff] %vm648_vm3, %v575_v46 }
  0xf8   : > { %670 = vst.msk [vmem:[#allocation2 + $0xa8] sm:$0xff] %vm648_vm3, %v595_v32 }
  0xfb   : > { %794 = vrot.lane.b32.xlu0 %v3020_v56, %s2479_s22  ;;  %796 = vrot.lane.b32.xlu1 %v3024_v55, %s2479_s22 }
  0xfc   : > { %798 = vrot.lane.b32.xlu2 %v3037_v34, %s2479_s22  ;;  %v2204_v34 = vld [vmem:[%s2529_s19 + $0x180] sm:$0xff] }
  0xfd   : > { %v579_v45 = vpop.permute.xlu0 %578  ;;  %v581_v50 = vpop.permute.xlu1 %580 }
  0xfe   : > { %662 = vst.msk [vmem:[#allocation2 + $0x68] sm:$0xff] %vm648_vm3, %v579_v45  ;;  %v601_v42 = vpop.permute.xlu2 %600  ;;  %v3940_v45 = vld [vmem:[#allocation6_spill] sm:$0xff] }
  0xff   : > { %663 = vst.msk [vmem:[#allocation2 + $0x70] sm:$0xff] %vm648_vm3, %v581_v50 }
 0x100   : > { %673 = vst.msk [vmem:[#allocation2 + $0xc0] sm:$0xff] %vm648_vm3, %v601_v42  ;;  %v3941_v42 = vld [vmem:[#allocation7_spill] sm:$0xff] }
 0x103   : > { %800 = vrot.lane.b32.xlu0 %v3050_v47, %s2479_s22  ;;  %802 = vrot.lane.b32.xlu1 %v3057_v36, %s2479_s22 }
 0x104   : > { %804 = vrot.lane.b32.xlu2 %v3064_v43, %s2479_s22 }
 0x105   : > { %v585_v55 = vpop.permute.xlu0 %584  ;;  %v587_v56 = vpop.permute.xlu1 %586 }
 0x106   : > { %665 = vst.msk [vmem:[#allocation2 + $0x80] sm:$0xff] %vm648_vm3, %v585_v55  ;;  %v607_v3 = vpop.permute.xlu2 %606  ;;  %v3942_v55 = vld [vmem:[#allocation8_spill] sm:$0xff] }
 0x107   : > { %666 = vst.msk [vmem:[#allocation2 + $0x88] sm:$0xff] %vm648_vm3, %v587_v56 }
 0x108   : > { %676 = vst.msk [vmem:[#allocation2 + $0xd8] sm:$0xff] %vm648_vm3, %v607_v3  ;;  %v3943_v3 = vld [vmem:[#allocation9_spill] sm:$0xff] }
 0x10b   : > { %806 = vrot.lane.b32.xlu0 %v3079_v37, %s2479_s22  ;;  %808 = vrot.lane.b32.xlu1 %v2204_v34, %s2479_s22 }
 0x10c   : > { %810 = vrot.lane.b32.xlu2 %v2205_v38, %s2479_s22 }
 0x10d   : > { %v591_v41 = vpop.permute.xlu0 %590  ;;  %v593_v54 = vpop.permute.xlu1 %592 }
 0x10e   : > { %668 = vst.msk [vmem:[#allocation2 + $0x98] sm:$0xff] %vm648_vm3, %v591_v41  ;;  %v613_v49 = vpop.permute.xlu2 %612  ;;  %v3944_v41 = vld [vmem:[#allocation10_spill] sm:$0xff] }
 0x10f   : > { %669 = vst.msk [vmem:[#allocation2 + $0xa0] sm:$0xff] %vm648_vm3, %v593_v54  ;;  %v3945_v54 = vld [vmem:[#allocation11_spill] sm:$0xff] }
 0x110   : > { %679 = vst.msk [vmem:[#allocation2 + $0xf0] sm:$0xff] %vm648_vm3, %v613_v49 }
 0x113   : > { %941 = vrot.lane.b32.xlu0 %v2533_v1, %s2480_s23  ;;  %943 = vrot.lane.b32.xlu1 %v2545_v4, %s2480_s23 }
 0x114   : > { %945 = vrot.lane.b32.xlu2 %v2539_v2, %s2480_s23 }
 0x115   : > { %v597_v37 = vpop.permute.xlu0 %596  ;;  %v599_v57 = vpop.permute.xlu1 %598 }
 0x116   : > { %671 = vst.msk [vmem:[#allocation2 + $0xb0] sm:$0xff] %vm648_vm3, %v597_v37  ;;  %v751_v51 = vpop.permute.xlu2 %750 }
 0x117   : > { %672 = vst.msk [vmem:[#allocation2 + $0xb8] sm:$0xff] %vm648_vm3, %v599_v57  ;;  %v3946_v57 = vld [vmem:[#allocation12_spill] sm:$0xff] }
 0x118   : > { %846 = vst.msk [vmem:[#allocation2 + $0x8] sm:$0xff] %vm844_vm4, %v751_v51 }
 0x11b   : > { %947 = vrot.lane.b32.xlu0 %v2551_v5, %s2480_s23  ;;  %949 = vrot.lane.b32.xlu1 %v2556_v6, %s2480_s23 }
 0x11c   : > { %951 = vrot.lane.b32.xlu2 %v2559_v7, %s2480_s23 }
 0x11d   : > { %v603_v1 = vpop.permute.xlu0 %602  ;;  %v605_v4 = vpop.permute.xlu1 %604 }
 0x11e   : > { %674 = vst.msk [vmem:[#allocation2 + $0xc8] sm:$0xff] %vm648_vm3, %v603_v1  ;;  %v757_v2 = vpop.permute.xlu2 %756  ;;  %v3947_v1 = vld [vmem:[#allocation13_spill] sm:$0xff] }
 0x11f   : > { %675 = vst.msk [vmem:[#allocation2 + $0xd0] sm:$0xff] %vm648_vm3, %v605_v4  ;;  %v3948_v4 = vld [vmem:[#allocation14_spill] sm:$0xff] }
 0x120   : > { %849 = vst.msk [vmem:[#allocation2 + $0x20] sm:$0xff] %vm844_vm4, %v757_v2 }
 0x123   : > { %953 = vrot.lane.b32.xlu0 %v2566_v8, %s2480_s23  ;;  %955 = vrot.lane.b32.xlu1 %v2571_v9, %s2480_s23 }
 0x124   : > { %957 = vrot.lane.b32.xlu2 %v2574_v10, %s2480_s23 }
 0x125   : > { %v609_v5 = vpop.permute.xlu0 %608  ;;  %v611_v6 = vpop.permute.xlu1 %610 }
 0x126   : > { %677 = vst.msk [vmem:[#allocation2 + $0xe0] sm:$0xff] %vm648_vm3, %v609_v5  ;;  %v763_v7 = vpop.permute.xlu2 %762 }
 0x127   : > { %678 = vst.msk [vmem:[#allocation2 + $0xe8] sm:$0xff] %vm648_vm3, %v611_v6  ;;  %v3949_v6 = vld [vmem:[#allocation15_spill] sm:$0xff] }
 0x128   : > { %852 = vst.msk [vmem:[#allocation2 + $0x38] sm:$0xff] %vm844_vm4, %v763_v7 }
 0x12b   : > { %959 = vrot.lane.b32.xlu0 %v2581_v11, %s2480_s23  ;;  %961 = vrot.lane.b32.xlu1 %v2586_v12, %s2480_s23 }
 0x12c   : > { %963 = vrot.lane.b32.xlu2 %v2589_v13, %s2480_s23 }
 0x12d   : > { %v615_v8 = vpop.permute.xlu0 %614  ;;  %v749_v9 = vpop.permute.xlu1 %748 }
 0x12e   : > { %680 = vst.msk [vmem:[#allocation2 + $0xf8] sm:$0xff] %vm648_vm3, %v615_v8  ;;  %v769_v10 = vpop.permute.xlu2 %768  ;;  %v3950_v8 = vld [vmem:[#allocation16_spill] sm:$0xff] }
 0x12f   : > { %845 = vst.msk [vmem:[#allocation2] sm:$0xff] %vm844_vm4, %v749_v9  ;;  %v3951_v9 = vld [vmem:[#allocation17_spill] sm:$0xff] }
 0x130   : > { %855 = vst.msk [vmem:[#allocation2 + $0x50] sm:$0xff] %vm844_vm4, %v769_v10 }
 0x133   : > { %965 = vrot.lane.b32.xlu0 %v2596_v14, %s2480_s23  ;;  %967 = vrot.lane.b32.xlu1 %v2601_v15, %s2480_s23 }
 0x134   : > { %969 = vrot.lane.b32.xlu2 %v2604_v16, %s2480_s23 }
 0x135   : > { %v753_v11 = vpop.permute.xlu0 %752  ;;  %v755_v12 = vpop.permute.xlu1 %754 }
 0x136   : > { %847 = vst.msk [vmem:[#allocation2 + $0x10] sm:$0xff] %vm844_vm4, %v753_v11  ;;  %v775_v13 = vpop.permute.xlu2 %774 }
 0x137   : > { %848 = vst.msk [vmem:[#allocation2 + $0x18] sm:$0xff] %vm844_vm4, %v755_v12  ;;  %v3952_v12 = vld [vmem:[#allocation18_spill] sm:$0xff] }
 0x138   : > { %858 = vst.msk [vmem:[#allocation2 + $0x68] sm:$0xff] %vm844_vm4, %v775_v13 }
 0x13b   : > { %971 = vrot.lane.b32.xlu0 %v2611_v17, %s2480_s23  ;;  %973 = vrot.lane.b32.xlu1 %v2616_v18, %s2480_s23 }
 0x13c   : > { %975 = vrot.lane.b32.xlu2 %v2619_v19, %s2480_s23 }
 0x13d   : > { %v759_v14 = vpop.permute.xlu0 %758  ;;  %v761_v15 = vpop.permute.xlu1 %760 }
 0x13e   : > { %850 = vst.msk [vmem:[#allocation2 + $0x28] sm:$0xff] %vm844_vm4, %v759_v14  ;;  %v781_v16 = vpop.permute.xlu2 %780  ;;  %v3953_v14 = vld [vmem:[#allocation19_spill] sm:$0xff] }
 0x13f   : > { %851 = vst.msk [vmem:[#allocation2 + $0x30] sm:$0xff] %vm844_vm4, %v761_v15  ;;  %v3954_v15 = vld [vmem:[#allocation20_spill] sm:$0xff] }
 0x140   : > { %861 = vst.msk [vmem:[#allocation2 + $0x80] sm:$0xff] %vm844_vm4, %v781_v16 }
 0x143   : > { %977 = vrot.lane.b32.xlu0 %v2626_v20, %s2480_s23  ;;  %979 = vrot.lane.b32.xlu1 %v2631_v21, %s2480_s23 }
 0x144   : > { %981 = vrot.lane.b32.xlu2 %v2634_v22, %s2480_s23 }
 0x145   : > { %v765_v17 = vpop.permute.xlu0 %764  ;;  %v767_v18 = vpop.permute.xlu1 %766 }
 0x146   : > { %853 = vst.msk [vmem:[#allocation2 + $0x40] sm:$0xff] %vm844_vm4, %v765_v17  ;;  %v787_v19 = vpop.permute.xlu2 %786 }
 0x147   : > { %854 = vst.msk [vmem:[#allocation2 + $0x48] sm:$0xff] %vm844_vm4, %v767_v18  ;;  %v3955_v18 = vld [vmem:[#allocation21_spill] sm:$0xff] }
 0x148   : > { %864 = vst.msk [vmem:[#allocation2 + $0x98] sm:$0xff] %vm844_vm4, %v787_v19 }
 0x14b   : > { %983 = vrot.lane.b32.xlu0 %v2641_v23, %s2480_s23  ;;  %985 = vrot.lane.b32.xlu1 %v2646_v24, %s2480_s23 }
 0x14c   : > { %987 = vrot.lane.b32.xlu2 %v2649_v25, %s2480_s23 }
 0x14d   : > { %v771_v20 = vpop.permute.xlu0 %770  ;;  %v773_v21 = vpop.permute.xlu1 %772 }
 0x14e   : > { %856 = vst.msk [vmem:[#allocation2 + $0x58] sm:$0xff] %vm844_vm4, %v771_v20  ;;  %v793_v22 = vpop.permute.xlu2 %792  ;;  %v3956_v20 = vld [vmem:[#allocation22_spill] sm:$0xff] }
 0x14f   : > { %857 = vst.msk [vmem:[#allocation2 + $0x60] sm:$0xff] %vm844_vm4, %v773_v21  ;;  %v3957_v21 = vld [vmem:[#allocation23_spill] sm:$0xff] }
 0x150   : > { %867 = vst.msk [vmem:[#allocation2 + $0xb0] sm:$0xff] %vm844_vm4, %v793_v22 }
 0x153   : > { %989 = vrot.lane.b32.xlu0 %v2656_v26, %s2480_s23  ;;  %991 = vrot.lane.b32.xlu1 %v2661_v27, %s2480_s23 }
 0x154   : > { %993 = vrot.lane.b32.xlu2 %v2664_v28, %s2480_s23  ;;  %v3268_v28 = vld [vmem:[%s2529_s19 + $0x181] sm:$0xff] }
 0x155   : > { %v777_v23 = vpop.permute.xlu0 %776  ;;  %v779_v24 = vpop.permute.xlu1 %778 }
 0x156   : > { %859 = vst.msk [vmem:[#allocation2 + $0x70] sm:$0xff] %vm844_vm4, %v777_v23  ;;  %v799_v25 = vpop.permute.xlu2 %798 }
 0x157   : > { %860 = vst.msk [vmem:[#allocation2 + $0x78] sm:$0xff] %vm844_vm4, %v779_v24  ;;  %v3958_v24 = vld [vmem:[#allocation24_spill] sm:$0xff] }
 0x158   : > { %870 = vst.msk [vmem:[#allocation2 + $0xc8] sm:$0xff] %vm844_vm4, %v799_v25 }
 0x15b   : > { %995 = vrot.lane.b32.xlu0 %v2671_v29, %s2480_s23  ;;  %997 = vrot.lane.b32.xlu1 %v2676_v30, %s2480_s23 }
 0x15c   : > { %999 = vrot.lane.b32.xlu2 %v2679_v31, %s2480_s23  ;;  %v3937_v31 = vld [vmem:[#allocation3_spill] sm:$0xff] }
 0x15d   : > { %v783_v26 = vpop.permute.xlu0 %782  ;;  %v785_v27 = vpop.permute.xlu1 %784 }
 0x15e   : > { %862 = vst.msk [vmem:[#allocation2 + $0x88] sm:$0xff] %vm844_vm4, %v783_v26  ;;  %v805_v59 = vpop.permute.xlu2 %804  ;;  %v3959_v26 = vld [vmem:[#allocation25_spill] sm:$0xff] }
 0x15f   : > { %863 = vst.msk [vmem:[#allocation2 + $0x90] sm:$0xff] %vm844_vm4, %v785_v27  ;;  %v3960_v27 = vld [vmem:[#allocation26_spill] sm:$0xff] }
 0x160   : > { %873 = vst.msk [vmem:[#allocation2 + $0xe0] sm:$0xff] %vm844_vm4, %v805_v59 }
 0x163   : > { %1001 = vrot.lane.b32.xlu0 %v3268_v28, %s2480_s23  ;;  %1003 = vrot.lane.b32.xlu1 %v3271_v53, %s2480_s23 }
 0x164   : > { %1134 = vrot.lane.b32.xlu2 %v3937_v31, %s2481_s24 }
 0x165   : > { %v789_v29 = vpop.permute.xlu0 %788  ;;  %v791_v30 = vpop.permute.xlu1 %790 }
 0x166   : > { %865 = vst.msk [vmem:[#allocation2 + $0xa0] sm:$0xff] %vm844_vm4, %v789_v29  ;;  %v811_v61 = vpop.permute.xlu2 %810 }
 0x167   : > { %866 = vst.msk [vmem:[#allocation2 + $0xa8] sm:$0xff] %vm844_vm4, %v791_v30  ;;  %v3961_v30 = vld [vmem:[#allocation27_spill] sm:$0xff] }
 0x168   : > { %876 = vst.msk [vmem:[#allocation2 + $0xf8] sm:$0xff] %vm844_vm4, %v811_v61  ;;  %v3962_v61 = vld [vmem:[#allocation28_spill] sm:$0xff] }
 0x16b   : > { %1136 = vrot.lane.b32.xlu0 %v3938_v52, %s2481_s24  ;;  %1138 = vrot.lane.b32.xlu1 %v3939_v39, %s2481_s24  ;;  %v3963_v52 = vld [vmem:[#allocation29_spill] sm:$0xff] }
 0x16c   : > { %1140 = vrot.lane.b32.xlu2 %v3940_v45, %s2481_s24 }
 0x16d   : > { %v795_v46 = vpop.permute.xlu0 %794  ;;  %v797_v32 = vpop.permute.xlu1 %796 }
 0x16e   : > { %868 = vst.msk [vmem:[#allocation2 + $0xb8] sm:$0xff] %vm844_vm4, %v795_v46  ;;  %v946_v50 = vpop.permute.xlu2 %945 }
 0x16f   : > { %869 = vst.msk [vmem:[#allocation2 + $0xc0] sm:$0xff] %vm844_vm4, %v797_v32  ;;  %v3964_v32 = vld [vmem:[#allocation30_spill] sm:$0xff] }
 0x170   : > { %1040 = vst.msk [vmem:[#allocation2 + $0x10] sm:$0xff] %vm1037_vm5, %v946_v50  ;;  %v3965_v50 = vld [vmem:[#allocation31_spill] sm:$0xff] }
 0x173   : > { %1142 = vrot.lane.b32.xlu0 %v3941_v42, %s2481_s24  ;;  %1144 = vrot.lane.b32.xlu1 %v3942_v55, %s2481_s24  ;;  %v3966_v42 = vld [vmem:[#allocation32_spill] sm:$0xff] }
 0x174   : > { %1146 = vrot.lane.b32.xlu2 %v3943_v3, %s2481_s24  ;;  %v3369_v55 = vld [vmem:[%s2529_s19 + $0x182] sm:$0xff]  ;;  %v3376_v3 = vld [vmem:[%s2529_s19 + $0x18a] sm:$0xff] }
 0x175   : > { %v801_v56 = vpop.permute.xlu0 %800  ;;  %v803_v34 = vpop.permute.xlu1 %802 }
 0x176   : > { %871 = vst.msk [vmem:[#allocation2 + $0xd0] sm:$0xff] %vm844_vm4, %v801_v56  ;;  %v952_v38 = vpop.permute.xlu2 %951 }
 0x177   : > { %872 = vst.msk [vmem:[#allocation2 + $0xd8] sm:$0xff] %vm844_vm4, %v803_v34 }
 0x178   : > { %1043 = vst.msk [vmem:[#allocation2 + $0x28] sm:$0xff] %vm1037_vm5, %v952_v38  ;;  %v2270_v38 = vld [vmem:[%s2529_s19 + $0x30] sm:$0xff] }
 0x17b   : > { %1148 = vrot.lane.b32.xlu0 %v3944_v41, %s2481_s24  ;;  %1150 = vrot.lane.b32.xlu1 %v3945_v54, %s2481_s24  ;;  %v2271_v54 = vld [vmem:[%s2529_s19 + $0x38] sm:$0xff] }
 0x17c   : > { %1152 = vrot.lane.b32.xlu2 %v3946_v57, %s2481_s24 }
 0x17d   : > { %v807_v49 = vpop.permute.xlu0 %806  ;;  %v809_v37 = vpop.permute.xlu1 %808 }
 0x17e   : > { %874 = vst.msk [vmem:[#allocation2 + $0xe8] sm:$0xff] %vm844_vm4, %v807_v49  ;;  %v958_v51 = vpop.permute.xlu2 %957 }
 0x17f   : > { %875 = vst.msk [vmem:[#allocation2 + $0xf0] sm:$0xff] %vm844_vm4, %v809_v37 }
 0x180   : > { %1046 = vst.msk [vmem:[#allocation2 + $0x40] sm:$0xff] %vm1037_vm5, %v958_v51  ;;  %v2274_v51 = vld [vmem:[%s2529_s19 + $0x60] sm:$0xff] }
 0x183   : > { %1154 = vrot.lane.b32.xlu0 %v3947_v1, %s2481_s24  ;;  %1156 = vrot.lane.b32.xlu1 %v3948_v4, %s2481_s24 }
 0x184   : > { %1158 = vrot.lane.b32.xlu2 %v3949_v6, %s2481_s24 }
 0x185   : > { %v942_v2 = vpop.permute.xlu0 %941  ;;  %v944_v5 = vpop.permute.xlu1 %943 }
 0x186   : > { %1038 = vst.msk [vmem:[#allocation2] sm:$0xff] %vm1037_vm5, %v942_v2  ;;  %v964_v7 = vpop.permute.xlu2 %963 }
 0x187   : > { %1039 = vst.msk [vmem:[#allocation2 + $0x8] sm:$0xff] %vm1037_vm5, %v944_v5 }
 0x188   : > { %1049 = vst.msk [vmem:[#allocation2 + $0x58] sm:$0xff] %vm1037_vm5, %v964_v7 }
 0x18b   : > { %1160 = vrot.lane.b32.xlu0 %v3950_v8, %s2481_s24  ;;  %1162 = vrot.lane.b32.xlu1 %v3951_v9, %s2481_s24 }
 0x18c   : > { %1164 = vrot.lane.b32.xlu2 %v3952_v12, %s2481_s24  ;;  %v2318_v12 = vld [vmem:[%s2529_s19 + $0xf1] sm:$0xff] }
 0x18d   : > { %v948_v10 = vpop.permute.xlu0 %947  ;;  %v950_v11 = vpop.permute.xlu1 %949 }
 0x18e   : > { %1041 = vst.msk [vmem:[#allocation2 + $0x18] sm:$0xff] %vm1037_vm5, %v948_v10  ;;  %v970_v13 = vpop.permute.xlu2 %969 }
 0x18f   : > { %1042 = vst.msk [vmem:[#allocation2 + $0x20] sm:$0xff] %vm1037_vm5, %v950_v11 }
 0x190   : > { %1052 = vst.msk [vmem:[#allocation2 + $0x70] sm:$0xff] %vm1037_vm5, %v970_v13 }
 0x193   : > { %1166 = vrot.lane.b32.xlu0 %v3953_v14, %s2481_s24  ;;  %1168 = vrot.lane.b32.xlu1 %v3954_v15, %s2481_s24  ;;  %v2350_v15 = vld [vmem:[%s2529_s19 + $0xf2] sm:$0xff] }
 0x194   : > { %1170 = vrot.lane.b32.xlu2 %v3955_v18, %s2481_s24 }
 0x195   : > { %v954_v16 = vpop.permute.xlu0 %953  ;;  %v956_v17 = vpop.permute.xlu1 %955 }
 0x196   : > { %1044 = vst.msk [vmem:[#allocation2 + $0x30] sm:$0xff] %vm1037_vm5, %v954_v16  ;;  %v976_v19 = vpop.permute.xlu2 %975  ;;  %v2358_v16 = vld [vmem:[%s2529_s19 + $0x152] sm:$0xff] }
 0x197   : > { %1045 = vst.msk [vmem:[#allocation2 + $0x38] sm:$0xff] %vm1037_vm5, %v956_v17 }
 0x198   : > { %1055 = vst.msk [vmem:[#allocation2 + $0x88] sm:$0xff] %vm1037_vm5, %v976_v19 }
 0x19b   : > { %1172 = vrot.lane.b32.xlu0 %v3956_v20, %s2481_s24  ;;  %1174 = vrot.lane.b32.xlu1 %v3957_v21, %s2481_s24  ;;  %v2310_v20 = vld [vmem:[%s2529_s19 + $0x91] sm:$0xff] }
 0x19c   : > { %1176 = vrot.lane.b32.xlu2 %v3958_v24, %s2481_s24  ;;  %v2287_v21 = vld [vmem:[%s2529_s19 + $0xf8] sm:$0xff] }
 0x19d   : > { %v960_v22 = vpop.permute.xlu0 %959  ;;  %v962_v23 = vpop.permute.xlu1 %961 }
 0x19e   : > { %1047 = vst.msk [vmem:[#allocation2 + $0x48] sm:$0xff] %vm1037_vm5, %v960_v22  ;;  %v982_v25 = vpop.permute.xlu2 %981 }
 0x19f   : > { %1048 = vst.msk [vmem:[#allocation2 + $0x50] sm:$0xff] %vm1037_vm5, %v962_v23 }
 0x1a0   : > { %1058 = vst.msk [vmem:[#allocation2 + $0xa0] sm:$0xff] %vm1037_vm5, %v982_v25  ;;  %v2334_v25 = vld [vmem:[%s2529_s19 + $0x32] sm:$0xff] }
 0x1a3   : > { %1178 = vrot.lane.b32.xlu0 %v3959_v26, %s2481_s24  ;;  %1180 = vrot.lane.b32.xlu1 %v3960_v27, %s2481_s24  ;;  %v2342_v26 = vld [vmem:[%s2529_s19 + $0x92] sm:$0xff] }
 0x1a4   : > { %1182 = vrot.lane.b32.xlu2 %v3961_v30, %s2481_s24 }
 0x1a5   : > { %v966_v59 = vpop.permute.xlu0 %965  ;;  %v968_v29 = vpop.permute.xlu1 %967 }
 0x1a6   : > { %1050 = vst.msk [vmem:[#allocation2 + $0x60] sm:$0xff] %vm1037_vm5, %v966_v59  ;;  %v988_v31 = vpop.permute.xlu2 %987  ;;  %v2319_v59 = vld [vmem:[%s2529_s19 + $0xf9] sm:$0xff] }
 0x1a7   : > { %1051 = vst.msk [vmem:[#allocation2 + $0x68] sm:$0xff] %vm1037_vm5, %v968_v29 }
 0x1a8   : > { %1061 = vst.msk [vmem:[#allocation2 + $0xb8] sm:$0xff] %vm1037_vm5, %v988_v31  ;;  %v2351_v31 = vld [vmem:[%s2529_s19 + $0xfa] sm:$0xff] }
 0x1ab   : > { %1184 = vrot.lane.b32.xlu0 %v3962_v61, %s2481_s24  ;;  %1186 = vrot.lane.b32.xlu1 %v3963_v52, %s2481_s24  ;;  %v2359_v52 = vld [vmem:[%s2529_s19 + $0x15a] sm:$0xff] }
 0x1ac   : > { %1188 = vrot.lane.b32.xlu2 %v3964_v32, %s2481_s24  ;;  %v2303_v32 = vld [vmem:[%s2529_s19 + $0x39] sm:$0xff] }
 0x1ad   : > { %v972_v39 = vpop.permute.xlu0 %971  ;;  %v974_v46 = vpop.permute.xlu1 %973 }
 0x1ae   : > { %1053 = vst.msk [vmem:[#allocation2 + $0x78] sm:$0xff] %vm1037_vm5, %v972_v39  ;;  %v994_v45 = vpop.permute.xlu2 %993 }
 0x1af   : > { %1054 = vst.msk [vmem:[#allocation2 + $0x80] sm:$0xff] %vm1037_vm5, %v974_v46 }
 0x1b0   : > { %1064 = vst.msk [vmem:[#allocation2 + $0xd0] sm:$0xff] %vm1037_vm5, %v994_v45  ;;  %v2311_v45 = vld [vmem:[%s2529_s19 + $0x99] sm:$0xff] }
 0x1b3   : > { %1190 = vrot.lane.b32.xlu0 %v3965_v50, %s2481_s24  ;;  %1192 = vrot.lane.b32.xlu1 %v3966_v42, %s2481_s24  ;;  %v2288_v42 = vld [vmem:[%s2529_s19 + $0x108] sm:$0xff] }
 0x1b4   : > { %1194 = vrot.lane.b32.xlu2 %v3369_v55, %s2481_s24 }
 0x1b5   : > { %v978_v56 = vpop.permute.xlu0 %977  ;;  %v980_v34 = vpop.permute.xlu1 %979 }
 0x1b6   : > { %1056 = vst.msk [vmem:[#allocation2 + $0x90] sm:$0xff] %vm1037_vm5, %v978_v56  ;;  %v1000_v41 = vpop.permute.xlu2 %999 }
 0x1b7   : > { %1057 = vst.msk [vmem:[#allocation2 + $0x98] sm:$0xff] %vm1037_vm5, %v980_v34 }
 0x1b8   : > { %1067 = vst.msk [vmem:[#allocation2 + $0xe8] sm:$0xff] %vm1037_vm5, %v1000_v41 }
 0x1bb   : > { %1196 = vrot.lane.b32.xlu0 %v3376_v3, %s2481_s24  ;;  %1330 = vrot.lane.b32.xlu1 %v2270_v38, %s2482_s25  ;;  %v2335_v38 = vld [vmem:[%s2529_s19 + $0x3a] sm:$0xff] }
 0x1bc   : > { %1332 = vrot.lane.b32.xlu2 %v2271_v54, %s2482_s25  ;;  %v2343_v54 = vld [vmem:[%s2529_s19 + $0x9a] sm:$0xff] }
 0x1bd   : > { %v984_v49 = vpop.permute.xlu0 %983  ;;  %v986_v37 = vpop.permute.xlu1 %985 }
 0x1be   : > { %1059 = vst.msk [vmem:[#allocation2 + $0xa8] sm:$0xff] %vm1037_vm5, %v984_v49  ;;  %v1135_v57 = vpop.permute.xlu2 %1134 }
 0x1bf   : > { %1060 = vst.msk [vmem:[#allocation2 + $0xb0] sm:$0xff] %vm1037_vm5, %v986_v37 }
 0x1c0   : > { %1231 = vst.msk [vmem:[#allocation2] sm:$0xff] %vm1230_vm6, %v1135_v57  ;;  %v2320_v57 = vld [vmem:[%s2529_s19 + $0x109] sm:$0xff] }
 0x1c3   : > { %1334 = vrot.lane.b32.xlu0 %v2850_v63, %s2482_s25  ;;  %1336 = vrot.lane.b32.xlu1 %v2854_v0, %s2482_s25  ;;  %v2277_v63 = vld [vmem:[%s2529_s19 + $0x80] sm:$0xff] }
 0x1c4   : > { %1338 = vrot.lane.b32.xlu2 %v2274_v51, %s2482_s25  ;;  %v2328_v51 = vld [vmem:[%s2529_s19 + $0x169] sm:$0xff] }
 0x1c5   : > { %v990_v1 = vpop.permute.xlu0 %989  ;;  %v992_v4 = vpop.permute.xlu1 %991 }
 0x1c6   : > { %1062 = vst.msk [vmem:[#allocation2 + $0xc0] sm:$0xff] %vm1037_vm5, %v990_v1  ;;  %v1141_v2 = vpop.permute.xlu2 %1140 }
 0x1c7   : > { %1063 = vst.msk [vmem:[#allocation2 + $0xc8] sm:$0xff] %vm1037_vm5, %v992_v4 }
 0x1c8   : > { %1234 = vst.msk [vmem:[#allocation2 + $0x18] sm:$0xff] %vm1230_vm6, %v1141_v2 }
 0x1cb   : > { %1340 = vrot.lane.b32.xlu0 %v2873_v35, %s2482_s25  ;;  %1342 = vrot.lane.b32.xlu1 %v2878_v40, %s2482_s25  ;;  %v2280_v35 = vld [vmem:[%s2529_s19 + $0xa8] sm:$0xff] }
 0x1cc   : > { %1344 = vrot.lane.b32.xlu2 %v2277_v63, %s2482_s25  ;;  %v2360_v63 = vld [vmem:[%s2529_s19 + $0x16a] sm:$0xff] }
 0x1cd   : > { %v996_v0 = vpop.permute.xlu0 %995  ;;  %v998_v5 = vpop.permute.xlu1 %997 }
 0x1ce   : > { %1065 = vst.msk [vmem:[#allocation2 + $0xd8] sm:$0xff] %vm1037_vm5, %v996_v0  ;;  %v1147_v6 = vpop.permute.xlu2 %1146  ;;  %v2304_v0 = vld [vmem:[%s2529_s19 + $0x49] sm:$0xff] }
 0x1cf   : > { %1066 = vst.msk [vmem:[#allocation2 + $0xe0] sm:$0xff] %vm1037_vm5, %v998_v5 }
 0x1d0   : > { %1237 = vst.msk [vmem:[#allocation2 + $0x30] sm:$0xff] %vm1230_vm6, %v1147_v6  ;;  %v2312_v6 = vld [vmem:[%s2529_s19 + $0xa9] sm:$0xff] }
 0x1d3   : > { %1346 = vrot.lane.b32.xlu0 %v2900_v48, %s2482_s25  ;;  %1348 = vrot.lane.b32.xlu1 %v2911_v33, %s2482_s25  ;;  %v2283_v33 = vld [vmem:[%s2529_s19 + $0xc8] sm:$0xff] }
 0x1d4   : > { %1350 = vrot.lane.b32.xlu2 %v2280_v35, %s2482_s25 }
 0x1d5   : > { %v1002_v40 = vpop.permute.xlu0 %1001  ;;  %v1004_v7 = vpop.permute.xlu1 %1003 }
 0x1d6   : > { %1068 = vst.msk [vmem:[#allocation2 + $0xf0] sm:$0xff] %vm1037_vm5, %v1002_v40  ;;  %v1153_v8 = vpop.permute.xlu2 %1152 }
 0x1d7   : > { %1069 = vst.msk [vmem:[#allocation2 + $0xf8] sm:$0xff] %vm1037_vm5, %v1004_v7  ;;  %v1892_v7 = vld [vmem:[%s3874_s1 + $0x78] sm:$0xff] }
 0x1d8   : > { %1240 = vst.msk [vmem:[#allocation2 + $0x48] sm:$0xff] %vm1230_vm6, %v1153_v8  ;;  %v1891_v8 = vld [vmem:[%s3874_s1 + $0x70] sm:$0xff]  ;;  %2370 = vmatpush.msra.mxu2 %v1892_v7  ;;  %2371 = vmatpush.msra.mxu3 %v1892_v7 }
 0x1d9   : > { %1897 = vmatpush.msra.mxu0 %v1892_v7  ;;  %2369 = vmatpush.msra.mxu1 %v1892_v7 }
 0x1da   : > { %2373 = vmatpush.msra.mxu2 %v1891_v8  ;;  %2374 = vmatpush.msra.mxu3 %v1891_v8 }
 0x1db   : > { %1352 = vrot.lane.b32.xlu0 %v2932_v60, %s2482_s25  ;;  %1354 = vrot.lane.b32.xlu1 %v2936_v62, %s2482_s25  ;;  %v2286_v60 = vld [vmem:[%s2529_s19 + $0xf0] sm:$0xff] }
 0x1dc   : > { %1356 = vrot.lane.b32.xlu2 %v2283_v33, %s2482_s25  ;;  %v2289_v33 = vld [vmem:[%s2529_s19 + $0x110] sm:$0xff]  ;;  %1898 = vmatpush.msra.mxu0 %v1891_v8 }
 0x1dd   : > { %v1137_v48 = vpop.permute.xlu0 %1136  ;;  %v1139_v9 = vpop.permute.xlu1 %1138  ;;  %2372 = vmatpush.msra.mxu1 %v1891_v8 }
 0x1de   : > { %1232 = vst.msk [vmem:[#allocation2 + $0x8] sm:$0xff] %vm1230_vm6, %v1137_v48  ;;  %v1159_v10 = vpop.permute.xlu2 %1158  ;;  %v2297_v48 = vld [vmem:[%s2529_s19 + $0x170] sm:$0xff] }
 0x1df   : > { %1233 = vst.msk [vmem:[#allocation2 + $0x10] sm:$0xff] %vm1230_vm6, %v1139_v9 }
 0x1e0   : > { %1243 = vst.msk [vmem:[#allocation2 + $0x60] sm:$0xff] %vm1230_vm6, %v1159_v10  ;;  %v1890_v10 = vld [vmem:[%s3874_s1 + $0x68] sm:$0xff] }
 0x1e1   : > { %2376 = vmatpush.msra.mxu2 %v1890_v10  ;;  %2377 = vmatpush.msra.mxu3 %v1890_v10 }
 0x1e2   : > { %1899 = vmatpush.msra.mxu0 %v1890_v10  ;;  %2375 = vmatpush.msra.mxu1 %v1890_v10 }
 0x1e3   : > { %1358 = vrot.lane.b32.xlu0 %v2955_v58, %s2482_s25  ;;  %1360 = vrot.lane.b32.xlu1 %v2960_v44, %s2482_s25  ;;  %v2326_v58 = vld [vmem:[%s2529_s19 + $0x151] sm:$0xff] }
 0x1e4   : > { %1362 = vrot.lane.b32.xlu2 %v2286_v60, %s2482_s25  ;;  %v2336_v60 = vld [vmem:[%s2529_s19 + $0x4a] sm:$0xff] }
 0x1e5   : > { %v1143_v62 = vpop.permute.xlu0 %1142  ;;  %v1145_v11 = vpop.permute.xlu1 %1144 }
 0x1e6   : > { %1235 = vst.msk [vmem:[#allocation2 + $0x20] sm:$0xff] %vm1230_vm6, %v1143_v62  ;;  %v1165_v13 = vpop.permute.xlu2 %1164  ;;  %v1889_v62 = vld [vmem:[%s3874_s1 + $0x60] sm:$0xff] }
 0x1e7   : > { %1236 = vst.msk [vmem:[#allocation2 + $0x28] sm:$0xff] %vm1230_vm6, %v1145_v11  ;;  %2379 = vmatpush.msra.mxu2 %v1889_v62  ;;  %2380 = vmatpush.msra.mxu3 %v1889_v62 }
 0x1e8   : > { %1246 = vst.msk [vmem:[#allocation2 + $0x78] sm:$0xff] %vm1230_vm6, %v1165_v13  ;;  %v1888_v13 = vld [vmem:[%s3874_s1 + $0x58] sm:$0xff]  ;;  %1900 = vmatpush.msra.mxu0 %v1889_v62  ;;  %2378 = vmatpush.msra.mxu1 %v1889_v62  ;;  %v2307_v62 = vld [vmem:[%s2529_s19 + $0x69] sm:$0xff] }
 0x1e9   : > { %2382 = vmatpush.msra.mxu2 %v1888_v13  ;;  %2383 = vmatpush.msra.mxu3 %v1888_v13 }
 0x1ea   : > { %1901 = vmatpush.msra.mxu0 %v1888_v13  ;;  %2381 = vmatpush.msra.mxu1 %v1888_v13 }
 0x1eb   : > { %1378 = vrot.lane.b32.xlu0 %v3050_v47, %s2482_s25  ;;  %1555 = vrot.lane.b32.xlu1 %v2318_v12, %s2483_s26  ;;  %v2302_v47 = vld [vmem:[%s2529_s19 + $0x31] sm:$0xff] }
 0x1ec   : > { %1571 = vrot.lane.b32.xlu2 %v2326_v58, %s2483_s26  ;;  %v1887_v58 = vld [vmem:[%s3874_s1 + $0x50] sm:$0xff] }
 0x1ed   : > { %v1149_v44 = vpop.permute.xlu0 %1148  ;;  %v1151_v14 = vpop.permute.xlu1 %1150  ;;  %2385 = vmatpush.msra.mxu2 %v1887_v58  ;;  %2386 = vmatpush.msra.mxu3 %v1887_v58 }
 0x1ee   : > { %1238 = vst.msk [vmem:[#allocation2 + $0x38] sm:$0xff] %vm1230_vm6, %v1149_v44  ;;  %v1171_v17 = vpop.permute.xlu2 %1170  ;;  %v2344_v44 = vld [vmem:[%s2529_s19 + $0xaa] sm:$0xff]  ;;  %1902 = vmatpush.msra.mxu0 %v1887_v58  ;;  %2384 = vmatpush.msra.mxu1 %v1887_v58 }
 0x1ef   : > { %1239 = vst.msk [vmem:[#allocation2 + $0x40] sm:$0xff] %vm1230_vm6, %v1151_v14  ;;  %v2321_v14 = vld [vmem:[%s2529_s19 + $0x111] sm:$0xff] }
 0x1f0   : > { %1249 = vst.msk [vmem:[#allocation2 + $0x90] sm:$0xff] %vm1230_vm6, %v1171_v17  ;;  %v2329_v17 = vld [vmem:[%s2529_s19 + $0x171] sm:$0xff] }
 0x1f3   : > { %1748 = vrot.lane.b32.xlu0 %v2350_v15, %s2484_s27  ;;  %1764 = vrot.lane.b32.xlu1 %v2358_v16, %s2484_s27  ;;  %v1886_v16 = vld [vmem:[%s3874_s1 + $0x48] sm:$0xff] }
 0x1f4   : > { %1523 = vrot.lane.b32.xlu2 %v2302_v47, %s2483_s26  ;;  %v1885_v47 = vld [vmem:[%s3874_s1 + $0x40] sm:$0xff]  ;;  %2388 = vmatpush.msra.mxu2 %v1886_v16 }
 0x1f5   : > { %v1155_v18 = vpop.permute.xlu0 %1154  ;;  %v1157_v19 = vpop.permute.xlu1 %1156  ;;  %2389 = vmatpush.msra.mxu3 %v1886_v16  ;;  %1903 = vmatpush.msra.mxu0 %v1886_v16 }
 0x1f6   : > { %1241 = vst.msk [vmem:[#allocation2 + $0x50] sm:$0xff] %vm1230_vm6, %v1155_v18  ;;  %v1177_v22 = vpop.permute.xlu2 %1176  ;;  %2391 = vmatpush.msra.mxu2 %v1885_v47  ;;  %2387 = vmatpush.msra.mxu1 %v1886_v16  ;;  %v2339_v16 = vld [vmem:[%s2529_s19 + $0x6a] sm:$0xff] }
 0x1f7   : > { %1242 = vst.msk [vmem:[#allocation2 + $0x58] sm:$0xff] %vm1230_vm6, %v1157_v19  ;;  %2392 = vmatpush.msra.mxu3 %v1885_v47  ;;  %1904 = vmatpush.msra.mxu0 %v1885_v47 }
 0x1f8   : > { %1252 = vst.msk [vmem:[#allocation2 + $0xa8] sm:$0xff] %vm1230_vm6, %v1177_v22  ;;  %v2353_v22 = vld [vmem:[%s2529_s19 + $0x112] sm:$0xff]  ;;  %2390 = vmatpush.msra.mxu1 %v1885_v47 }
 0x1fb   : > { %1539 = vrot.lane.b32.xlu0 %v2310_v20, %s2483_s26  ;;  %1364 = vrot.lane.b32.xlu1 %v2287_v21, %s2482_s25  ;;  %v1884_v20 = vld [vmem:[%s3874_s1 + $0x38] sm:$0xff]  ;;  %v1883_v21 = vld [vmem:[%s3874_s1 + $0x30] sm:$0xff] }
 0x1fc   : > { %1380 = vrot.lane.b32.xlu2 %v3057_v36, %s2482_s25  ;;  %v2327_v36 = vld [vmem:[%s2529_s19 + $0x159] sm:$0xff]  ;;  %2394 = vmatpush.msra.mxu2 %v1884_v20 }
 0x1fd   : > { %v1161_v23 = vpop.permute.xlu0 %1160  ;;  %v1163_v24 = vpop.permute.xlu1 %1162  ;;  %2395 = vmatpush.msra.mxu3 %v1884_v20  ;;  %1905 = vmatpush.msra.mxu0 %v1884_v20 }
 0x1fe   : > { %1244 = vst.msk [vmem:[#allocation2 + $0x68] sm:$0xff] %vm1230_vm6, %v1161_v23  ;;  %v1183_v27 = vpop.permute.xlu2 %1182  ;;  %v2361_v23 = vld [vmem:[%s2529_s19 + $0x172] sm:$0xff]  ;;  %2397 = vmatpush.msra.mxu2 %v1883_v21  ;;  %2393 = vmatpush.msra.mxu1 %v1884_v20  ;;  %v2347_v20 = vld [vmem:[%s2529_s19 + $0xca] sm:$0xff] }
 0x1ff   : > { %1245 = vst.msk [vmem:[#allocation2 + $0x70] sm:$0xff] %vm1230_vm6, %v1163_v24  ;;  %2398 = vmatpush.msra.mxu3 %v1883_v21  ;;  %1906 = vmatpush.msra.mxu0 %v1883_v21 }
 0x200   : > { %1255 = vst.msk [vmem:[#allocation2 + $0xc0] sm:$0xff] %vm1230_vm6, %v1183_v27  ;;  %v1881_v27 = vld [vmem:[%s3874_s1 + $0x20] sm:$0xff]  ;;  %2396 = vmatpush.msra.mxu1 %v1883_v21 }
 0x201   : > { %v2324_v21 = vld [vmem:[%s2529_s19 + $0x139] sm:$0xff] }
 0x203   : > { %1716 = vrot.lane.b32.xlu0 %v2334_v25, %s2484_s27  ;;  %1732 = vrot.lane.b32.xlu1 %v2342_v26, %s2484_s27  ;;  %v1882_v25 = vld [vmem:[%s3874_s1 + $0x28] sm:$0xff]  ;;  %v2305_v26 = vld [vmem:[%s2529_s19 + $0x51] sm:$0xff] }
 0x204   : > { %1557 = vrot.lane.b32.xlu2 %v2319_v59, %s2483_s26  ;;  %2400 = vmatpush.msra.mxu2 %v1882_v25 }
 0x205   : > { %v1167_v29 = vpop.permute.xlu0 %1166  ;;  %v1169_v30 = vpop.permute.xlu1 %1168  ;;  %2401 = vmatpush.msra.mxu3 %v1882_v25  ;;  %1907 = vmatpush.msra.mxu0 %v1882_v25 }
 0x206   : > { %1247 = vst.msk [vmem:[#allocation2 + $0x80] sm:$0xff] %vm1230_vm6, %v1167_v29  ;;  %v1189_v61 = vpop.permute.xlu2 %1188  ;;  %2403 = vmatpush.msra.mxu2 %v1881_v27  ;;  %2399 = vmatpush.msra.mxu1 %v1882_v25 }
 0x207   : > { %1248 = vst.msk [vmem:[#allocation2 + $0x88] sm:$0xff] %vm1230_vm6, %v1169_v30  ;;  %v1880_v30 = vld [vmem:[%s3874_s1 + $0x18] sm:$0xff]  ;;  %2404 = vmatpush.msra.mxu3 %v1881_v27  ;;  %1908 = vmatpush.msra.mxu0 %v1881_v27 }
 0x208   : > { %1258 = vst.msk [vmem:[#allocation2 + $0xd8] sm:$0xff] %vm1230_vm6, %v1189_v61  ;;  %v2290_v61 = vld [vmem:[%s2529_s19 + $0x120] sm:$0xff]  ;;  %2406 = vmatpush.msra.mxu2 %v1880_v30  ;;  %2402 = vmatpush.msra.mxu1 %v1881_v27 }
 0x209   : > { %2407 = vmatpush.msra.mxu3 %v1880_v30  ;;  %1909 = vmatpush.msra.mxu0 %v1880_v30  ;;  %v2356_v27 = vld [vmem:[%s2529_s19 + $0x13a] sm:$0xff] }
 0x20a   : > { %2405 = vmatpush.msra.mxu1 %v1880_v30  ;;  %v2308_v30 = vld [vmem:[%s2529_s19 + $0x79] sm:$0xff] }
 0x20b   : > { %1573 = vrot.lane.b32.xlu0 %v2327_v36, %s2483_s26  ;;  %1750 = vrot.lane.b32.xlu1 %v2351_v31, %s2484_s27  ;;  %v1879_v36 = vld [vmem:[%s3874_s1 + $0x10] sm:$0xff] }
 0x20c   : > { %1766 = vrot.lane.b32.xlu2 %v2359_v52, %s2484_s27  ;;  %v2313_v31 = vld [vmem:[%s2529_s19 + $0xb1] sm:$0xff]  ;;  %2409 = vmatpush.msra.mxu2 %v1879_v36 }
 0x20d   : > { %v1173_v39 = vpop.permute.xlu0 %1172  ;;  %v1175_v46 = vpop.permute.xlu1 %1174  ;;  %2410 = vmatpush.msra.mxu3 %v1879_v36  ;;  %1910 = vmatpush.msra.mxu0 %v1879_v36 }
 0x20e   : > { %1250 = vst.msk [vmem:[#allocation2 + $0x98] sm:$0xff] %vm1230_vm6, %v1173_v39  ;;  %v1195_v50 = vpop.permute.xlu2 %1194  ;;  %v1878_v39 = vld [vmem:[%s3874_s1 + $0x8] sm:$0xff]  ;;  %2408 = vmatpush.msra.mxu1 %v1879_v36 }
 0x20f   : > { %1251 = vst.msk [vmem:[#allocation2 + $0xa0] sm:$0xff] %vm1230_vm6, %v1175_v46  ;;  %v2298_v46 = vld [vmem:[%s2529_s19 + $0x180] sm:$0xff]  ;;  %2412 = vmatpush.msra.mxu2 %v1878_v39  ;;  %2413 = vmatpush.msra.mxu3 %v1878_v39 }
 0x210   : > { %1261 = vst.msk [vmem:[#allocation2 + $0xf0] sm:$0xff] %vm1230_vm6, %v1195_v50  ;;  %1911 = vmatpush.msra.mxu0 %v1878_v39  ;;  %2411 = vmatpush.msra.mxu1 %v1878_v39  ;;  %v2293_v39 = vld [vmem:[%s2529_s19 + $0x140] sm:$0xff] }
 0x213   : > { %1525 = vrot.lane.b32.xlu0 %v2303_v32, %s2483_s26  ;;  %1541 = vrot.lane.b32.xlu1 %v2311_v45, %s2483_s26  ;;  %v1877_v32 = vld [vmem:[%s3874_s1] sm:$0xff] }
 0x214   : > { %1366 = vrot.lane.b32.xlu2 %v2288_v42, %s2482_s25  ;;  %2415 = vmatpush.msra.mxu2 %v1877_v32  ;;  %v2337_v42 = vld [vmem:[%s2529_s19 + $0x52] sm:$0xff] }
 0x215   : > { %v1179_v56 = vpop.permute.xlu0 %1178  ;;  %v1181_v34 = vpop.permute.xlu1 %1180  ;;  %2416 = vmatpush.msra.mxu3 %v1877_v32  ;;  %1912 = vmatpush.msra.mxu0 %v1877_v32 }
 0x216   : > { %1253 = vst.msk [vmem:[#allocation2 + $0xb0] sm:$0xff] %vm1230_vm6, %v1179_v56  ;;  %v1333_v41 = vpop.permute.xlu2 %1332  ;;  %v2345_v56 = vld [vmem:[%s2529_s19 + $0xb2] sm:$0xff]  ;;  %2414 = vmatpush.msra.mxu1 %v1877_v32  ;;  %v2301_v32 = vld [vmem:[%s2529_s19 + $0x1a0] sm:$0xff] }
 0x217   : > { %1254 = vst.msk [vmem:[#allocation2 + $0xb8] sm:$0xff] %vm1230_vm6, %v1181_v34 }
 0x218   : > { %1428 = vst.msk [vmem:[#allocation2 + $0x8] sm:$0xff] %vm1426_vm7, %v1333_v41 }
 0x21b   : > { %1382 = vrot.lane.b32.xlu0 %v3064_v43, %s2482_s25  ;;  %1718 = vrot.lane.b32.xlu1 %v2335_v38, %s2484_s27  ;;  %v2352_v43 = vld [vmem:[%s2529_s19 + $0x10a] sm:$0xff]  ;;  %v2322_v38 = vld [vmem:[%s2529_s19 + $0x121] sm:$0xff] }
 0x21c   : > { %1734 = vrot.lane.b32.xlu2 %v2343_v54, %s2484_s27 }
 0x21d   : > { %v1185_v49 = vpop.permute.xlu0 %1184  ;;  %v1187_v37 = vpop.permute.xlu1 %1186 }
 0x21e   : > { %1256 = vst.msk [vmem:[#allocation2 + $0xc8] sm:$0xff] %vm1230_vm6, %v1185_v49  ;;  %v1339_v1 = vpop.permute.xlu2 %1338  ;;  %v2354_v49 = vld [vmem:[%s2529_s19 + $0x122] sm:$0xff] }
 0x21f   : > { %1257 = vst.msk [vmem:[#allocation2 + $0xd0] sm:$0xff] %vm1230_vm6, %v1187_v37 }
 0x220   : > { %1431 = vst.msk [vmem:[#allocation2 + $0x20] sm:$0xff] %vm1426_vm7, %v1339_v1  ;;  %v2306_v1 = vld [vmem:[%s2529_s19 + $0x61] sm:$0xff] }
 0x223   : > { %1559 = vrot.lane.b32.xlu0 %v2320_v57, %s2483_s26  ;;  %1575 = vrot.lane.b32.xlu1 %v2328_v51, %s2483_s26 }
 0x224   : > { %1752 = vrot.lane.b32.xlu2 %v2352_v43, %s2484_s27  ;;  %v2314_v43 = vld [vmem:[%s2529_s19 + $0xc1] sm:$0xff] }
 0x225   : > { %v1191_v4 = vpop.permute.xlu0 %1190  ;;  %v1193_v2 = vpop.permute.xlu1 %1192 }
 0x226   : > { %1259 = vst.msk [vmem:[#allocation2 + $0xe0] sm:$0xff] %vm1230_vm6, %v1191_v4  ;;  %v1345_v5 = vpop.permute.xlu2 %1344 }
 0x227   : > { %1260 = vst.msk [vmem:[#allocation2 + $0xe8] sm:$0xff] %vm1230_vm6, %v1193_v2 }
 0x228   : > { %1434 = vst.msk [vmem:[#allocation2 + $0x38] sm:$0xff] %vm1426_vm7, %v1345_v5 }
 0x22b   : > { %1768 = vrot.lane.b32.xlu0 %v2360_v63, %s2484_s27  ;;  %1527 = vrot.lane.b32.xlu1 %v2304_v0, %s2483_s26  ;;  %v2338_v0 = vld [vmem:[%s2529_s19 + $0x62] sm:$0xff] }
 0x22c   : > { %1543 = vrot.lane.b32.xlu2 %v2312_v6, %s2483_s26  ;;  %v2346_v6 = vld [vmem:[%s2529_s19 + $0xc2] sm:$0xff] }
 0x22d   : > { %v1197_v35 = vpop.permute.xlu0 %1196  ;;  %v1331_v40 = vpop.permute.xlu1 %1330 }
 0x22e   : > { %1262 = vst.msk [vmem:[#allocation2 + $0xf8] sm:$0xff] %vm1230_vm6, %v1197_v35  ;;  %v1351_v9 = vpop.permute.xlu2 %1350 }
 0x22f   : > { %1427 = vst.msk [vmem:[#allocation2] sm:$0xff] %vm1426_vm7, %v1331_v40 }
 0x230   : > { %1437 = vst.msk [vmem:[#allocation2 + $0x50] sm:$0xff] %vm1426_vm7, %v1351_v9  ;;  %v2355_v9 = vld [vmem:[%s2529_s19 + $0x12a] sm:$0xff] }
 0x233   : > { %1368 = vrot.lane.b32.xlu0 %v2289_v33, %s2482_s25  ;;  %1384 = vrot.lane.b32.xlu1 %v2297_v48, %s2482_s25  ;;  %v2323_v33 = vld [vmem:[%s2529_s19 + $0x129] sm:$0xff] }
 0x234   : > { %1720 = vrot.lane.b32.xlu2 %v2336_v60, %s2484_s27 }
 0x235   : > { %v1335_v11 = vpop.permute.xlu0 %1334  ;;  %v1337_v12 = vpop.permute.xlu1 %1336 }
 0x236   : > { %1429 = vst.msk [vmem:[#allocation2 + $0x10] sm:$0xff] %vm1426_vm7, %v1335_v11  ;;  %v1357_v15 = vpop.permute.xlu2 %1356 }
 0x237   : > { %1430 = vst.msk [vmem:[#allocation2 + $0x18] sm:$0xff] %vm1426_vm7, %v1337_v12  ;;  %v2315_v12 = vld [vmem:[%s2529_s19 + $0xc9] sm:$0xff] }
 0x238   : > { %1440 = vst.msk [vmem:[#allocation2 + $0x68] sm:$0xff] %vm1426_vm7, %v1357_v15 }
 0x23b   : > { %1736 = vrot.lane.b32.xlu0 %v2344_v44, %s2484_s27  ;;  %1561 = vrot.lane.b32.xlu1 %v2321_v14, %s2483_s26  ;;  %v2292_v14 = vld [vmem:[%s2529_s19 + $0x138] sm:$0xff] }
 0x23c   : > { %1577 = vrot.lane.b32.xlu2 %v2329_v17, %s2483_s26 }
 0x23d   : > { %v1341_v18 = vpop.permute.xlu0 %1340  ;;  %v1343_v19 = vpop.permute.xlu1 %1342 }
 0x23e   : > { %1432 = vst.msk [vmem:[#allocation2 + $0x28] sm:$0xff] %vm1426_vm7, %v1341_v18  ;;  %v1363_v24 = vpop.permute.xlu2 %1362 }
 0x23f   : > { %1433 = vst.msk [vmem:[#allocation2 + $0x30] sm:$0xff] %vm1426_vm7, %v1343_v19 }
 0x240   : > { %1443 = vst.msk [vmem:[#allocation2 + $0x80] sm:$0xff] %vm1426_vm7, %v1363_v24 }
 0x243   : > { %1754 = vrot.lane.b32.xlu0 %v2353_v22, %s2484_s27  ;;  %1770 = vrot.lane.b32.xlu1 %v2361_v23, %s2484_s27  ;;  %v2332_v23 = vld [vmem:[%s2529_s19 + $0x199] sm:$0xff] }
 0x244   : > { %1529 = vrot.lane.b32.xlu2 %v2305_v26, %s2483_s26 }
 0x245   : > { %v1347_v59 = vpop.permute.xlu0 %1346  ;;  %v1349_v29 = vpop.permute.xlu1 %1348 }
 0x246   : > { %1435 = vst.msk [vmem:[#allocation2 + $0x40] sm:$0xff] %vm1426_vm7, %v1347_v59  ;;  %v1572_v52 = vpop.permute.xlu2 %1571  ;;  %v2364_v59 = vld [vmem:[%s2529_s19 + $0x19a] sm:$0xff] }
 0x247   : > { %1436 = vst.msk [vmem:[#allocation2 + $0x48] sm:$0xff] %vm1426_vm7, %v1349_v29 }
 0x24b   : > { %1545 = vrot.lane.b32.xlu0 %v2313_v31, %s2483_s26  ;;  %1370 = vrot.lane.b32.xlu1 %v2290_v61, %s2482_s25 }
 0x24c   : > { %1386 = vrot.lane.b32.xlu2 %v2298_v46, %s2482_s25 }
 0x24d   : > { %v1353_v45 = vpop.permute.xlu0 %1352  ;;  %v1355_v50 = vpop.permute.xlu1 %1354 }
 0x24e   : > { %1438 = vst.msk [vmem:[#allocation2 + $0x58] sm:$0xff] %vm1426_vm7, %v1353_v45  ;;  %v1524_v34 = vpop.permute.xlu2 %1523 }
 0x24f   : > { %1439 = vst.msk [vmem:[#allocation2 + $0x60] sm:$0xff] %vm1426_vm7, %v1355_v50 }
 0x250   : > { %1620 = vst.msk [vmem:[#allocation2] sm:$0xff] %vm1619_vm8, %v1524_v34  ;;  %v2348_v34 = vld [vmem:[%s2529_s19 + $0xda] sm:$0xff] }
 0x253   : > { %1722 = vrot.lane.b32.xlu0 %v2337_v42, %s2484_s27  ;;  %1738 = vrot.lane.b32.xlu1 %v2345_v56, %s2484_s27  ;;  %v2340_v56 = vld [vmem:[%s2529_s19 + $0x7a] sm:$0xff] }
 0x254   : > { %1563 = vrot.lane.b32.xlu2 %v2322_v38, %s2483_s26 }
 0x255   : > { %v1359_v41 = vpop.permute.xlu0 %1358  ;;  %v1361_v54 = vpop.permute.xlu1 %1360 }
 0x256   : > { %1441 = vst.msk [vmem:[#allocation2 + $0x70] sm:$0xff] %vm1426_vm7, %v1359_v41  ;;  %v1381_v37 = vpop.permute.xlu2 %1380  ;;  %v2325_v41 = vld [vmem:[%s2529_s19 + $0x141] sm:$0xff] }
 0x257   : > { %1442 = vst.msk [vmem:[#allocation2 + $0x78] sm:$0xff] %vm1426_vm7, %v1361_v54 }
 0x258   : > { %1452 = vst.msk [vmem:[#allocation2 + $0xc8] sm:$0xff] %vm1426_vm7, %v1381_v37 }
 0x25b   : > { %1579 = vrot.lane.b32.xlu0 %v3268_v28, %s2483_s26  ;;  %1756 = vrot.lane.b32.xlu1 %v2354_v49, %s2484_s27  ;;  %v2291_v28 = vld [vmem:[%s2529_s19 + $0x128] sm:$0xff] }
 0x25c   : > { %1772 = vrot.lane.b32.xlu2 %v3369_v55, %s2484_s27  ;;  %v2299_v55 = vld [vmem:[%s2529_s19 + $0x188] sm:$0xff] }
 0x25d   : > { %v1379_v57 = vpop.permute.xlu0 %1378  ;;  %v1556_v51 = vpop.permute.xlu1 %1555 }
 0x25e   : > { %1451 = vst.msk [vmem:[#allocation2 + $0xc0] sm:$0xff] %vm1426_vm7, %v1379_v57  ;;  %v1558_v4 = vpop.permute.xlu2 %1557 }
 0x25f   : > { %1636 = vst.msk [vmem:[#allocation2 + $0x80] sm:$0xff] %vm1619_vm8, %v1556_v51  ;;  %v2333_v51 = vld [vmem:[%s2529_s19 + $0x1a1] sm:$0xff] }
 0x260   : > { %1644 = vst.msk [vmem:[#allocation2 + $0xc0] sm:$0xff] %vm1619_vm8, %v1572_v52  ;;  %v2316_v52 = vld [vmem:[%s2529_s19 + $0xd9] sm:$0xff] }
 0x263   : > { %1531 = vrot.lane.b32.xlu0 %v2306_v1, %s2483_s26  ;;  %1547 = vrot.lane.b32.xlu1 %v2314_v43, %s2483_s26  ;;  %v2357_v1 = vld [vmem:[%s2529_s19 + $0x142] sm:$0xff] }
 0x264   : > { %1372 = vrot.lane.b32.xlu2 %v2291_v28, %s2482_s25 }
 0x265   : > { %v1749_v2 = vpop.permute.xlu0 %1748  ;;  %v1765_v63 = vpop.permute.xlu1 %1764 }
 0x266   : > { %1829 = vst.msk [vmem:[#allocation2 + $0x80] sm:$0xff] %vm1812_vm9, %v1749_v2  ;;  %v1767_v5 = vpop.permute.xlu2 %1766 }
 0x267   : > { %1837 = vst.msk [vmem:[#allocation2 + $0xc0] sm:$0xff] %vm1812_vm9, %v1765_v63  ;;  %v2309_v63 = vld [vmem:[%s2529_s19 + $0x81] sm:$0xff] }
 0x26b   : > { %1388 = vrot.lane.b32.xlu0 %v2299_v55, %s2482_s25  ;;  %1724 = vrot.lane.b32.xlu1 %v2338_v0, %s2484_s27  ;;  %v2317_v55 = vld [vmem:[%s2529_s19 + $0xe1] sm:$0xff] }
 0x26c   : > { %1740 = vrot.lane.b32.xlu2 %v2346_v6, %s2484_s27 }
 0x26d   : > { %v1540_v35 = vpop.permute.xlu0 %1539  ;;  %v1861_v40 = vld [vmem:[#allocation2 + $0x80] sm:$0xff]  ;;  %v1365_v7 = vpop.permute.xlu1 %1364 }
 0x26e   : > { %1628 = vst.msk [vmem:[#allocation2 + $0x40] sm:$0xff] %vm1619_vm8, %v1540_v35  ;;  %1961 = vmatmul.f32.vlgmr.msra.gmra.mxu2 %v1861_v40  ;;  %v1869_v8 = vld [vmem:[#allocation2 + $0xc0] sm:$0xff]  ;;  %v1367_v48 = vpop.permute.xlu2 %1366 }
 0x26f   : > { %1444 = vst.msk [vmem:[#allocation2 + $0x88] sm:$0xff] %vm1426_vm7, %v1365_v7  ;;  %1985 = vmatmul.f32.vlgmr.msra.gmra.mxu3 %v1869_v8  ;;  %v2349_v7 = vld [vmem:[%s2529_s19 + $0xe2] sm:$0xff] }
 0x270   : > { %1637 = vst.msk [vmem:[#allocation2 + $0x88] sm:$0xff] %vm1619_vm8, %v1558_v4  ;;  %v2365_v4 = vld [vmem:[%s2529_s19 + $0x1a2] sm:$0xff] }
 0x271   : > { %1445 = vst.msk [vmem:[#allocation2 + $0x90] sm:$0xff] %vm1426_vm7, %v1367_v48 }
 0x273   : > { %1565 = vrot.lane.b32.xlu0 %v2323_v33, %s2483_s26  ;;  %1581 = vrot.lane.b32.xlu1 %v3271_v53, %s2483_s26 }
 0x274   : > { %1758 = vrot.lane.b32.xlu2 %v2355_v9, %s2484_s27 }
 0x275   : > { %v1717_v10 = vpop.permute.xlu0 %1716  ;;  %v1733_v60 = vpop.permute.xlu1 %1732 }
 0x276   : > { %1813 = vst.msk [vmem:[#allocation2] sm:$0xff] %vm1812_vm9, %v1717_v10  ;;  %v1735_v11 = vpop.permute.xlu2 %1734 }
 0x277   : > { %1821 = vst.msk [vmem:[#allocation2 + $0x40] sm:$0xff] %vm1812_vm9, %v1733_v60 }
 0x27b   : > { %1774 = vrot.lane.b32.xlu0 %v3376_v3, %s2484_s27  ;;  %1533 = vrot.lane.b32.xlu1 %v2307_v62, %s2483_s26  ;;  %v2300_v3 = vld [vmem:[%s2529_s19 + $0x198] sm:$0xff] }
 0x27c   : > { %1549 = vrot.lane.b32.xlu2 %v2315_v12, %s2483_s26 }
 0x27d   : > { %v1574_v53 = vpop.permute.xlu0 %1573  ;;  %v1845_v13 = vld [vmem:[#allocation2] sm:$0xff]  ;;  %v1751_v58 = vpop.permute.xlu1 %1750 }
 0x27e   : > { %1645 = vst.msk [vmem:[#allocation2 + $0xc8] sm:$0xff] %vm1619_vm8, %v1574_v53  ;;  %1913 = vmatmul.f32.vlgmr.msra.gmra.mxu0 %v1845_v13  ;;  %v1853_v44 = vld [vmem:[#allocation2 + $0x40] sm:$0xff]  ;;  %v1753_v15 = vpop.permute.xlu2 %1752 }
 0x27f   : > { %1830 = vst.msk [vmem:[#allocation2 + $0x88] sm:$0xff] %vm1812_vm9, %v1751_v58  ;;  %1937 = vmatmul.f32.vlgmr.msra.gmra.mxu1 %v1853_v44 }
 0x280   : > { %1838 = vst.msk [vmem:[#allocation2 + $0xc8] sm:$0xff] %vm1812_vm9, %v1767_v5  ;;  %v2341_v5 = vld [vmem:[%s2529_s19 + $0x82] sm:$0xff] }
 0x283   : > { %1374 = vrot.lane.b32.xlu0 %v2292_v14, %s2482_s25  ;;  %1390 = vrot.lane.b32.xlu1 %v2300_v3, %s2482_s25 }
 0x284   : > { %1726 = vrot.lane.b32.xlu2 %v2339_v16, %s2484_s27 }
 0x285   : > { %v1526_v17 = vpop.permute.xlu0 %1525  ;;  %v1542_v47 = vpop.permute.xlu1 %1541 }
 0x286   : > { %1621 = vst.msk [vmem:[#allocation2 + $0x8] sm:$0xff] %vm1619_vm8, %v1526_v17  ;;  %v1862_v18 = vld [vmem:[#allocation2 + $0x88] sm:$0xff]  ;;  %v1544_v22 = vpop.permute.xlu2 %1543 }
 0x287   : > { %1629 = vst.msk [vmem:[#allocation2 + $0x48] sm:$0xff] %vm1619_vm8, %v1542_v47  ;;  %1964 = vmatmul.f32.gmra.mxu2 %v1862_v18  ;;  %v1870_v19 = vld [vmem:[#allocation2 + $0xc8] sm:$0xff] }
 0x288   : > { %1988 = vmatmul.f32.gmra.mxu3 %v1870_v19  ;;  %1822 = vst.msk [vmem:[#allocation2 + $0x48] sm:$0xff] %vm1812_vm9, %v1735_v11 }
 0x289   : > { %1630 = vst.msk [vmem:[#allocation2 + $0x50] sm:$0xff] %vm1619_vm8, %v1544_v22 }
 0x28b   : > { %1742 = vrot.lane.b32.xlu0 %v2347_v20, %s2484_s27  ;;  %1567 = vrot.lane.b32.xlu1 %v2324_v21, %s2483_s26 }
 0x28c   : > { %1583 = vrot.lane.b32.xlu2 %v2332_v23, %s2483_s26 }
 0x28d   : > { %v1383_v24 = vpop.permute.xlu0 %1382  ;;  %v1719_v25 = vpop.permute.xlu1 %1718 }
 0x28e   : > { %1453 = vst.msk [vmem:[#allocation2 + $0xd0] sm:$0xff] %vm1426_vm7, %v1383_v24  ;;  %v1721_v29 = vpop.permute.xlu2 %1720 }
 0x28f   : > { %1814 = vst.msk [vmem:[#allocation2 + $0x8] sm:$0xff] %vm1812_vm9, %v1719_v25  ;;  %v1854_v26 = vld [vmem:[#allocation2 + $0x48] sm:$0xff] }
 0x290   : > { %1940 = vmatmul.f32.gmra.mxu1 %v1854_v26 }
 0x293   : > { %1760 = vrot.lane.b32.xlu0 %v2356_v27, %s2484_s27  ;;  %1776 = vrot.lane.b32.xlu1 %v2364_v59, %s2484_s27  ;;  %v3737_v59 = vld [vmem:[%s3875_s2] ss:$0 sm:$0xff] }
 0x294   : > { %1535 = vrot.lane.b32.xlu2 %v2308_v30, %s2483_s26 }
 0x295   : > { %v1560_v36 = vpop.permute.xlu0 %1559  ;;  %v1576_v31 = vpop.permute.xlu1 %1575 }
 0x296   : > { %1638 = vst.msk [vmem:[#allocation2 + $0x90] sm:$0xff] %vm1619_vm8, %v1560_v36  ;;  %v1846_v61 = vld [vmem:[#allocation2 + $0x8] sm:$0xff]  ;;  %v1578_v46 = vpop.permute.xlu2 %1577 }
 0x297   : > { %1646 = vst.msk [vmem:[#allocation2 + $0xd0] sm:$0xff] %vm1619_vm8, %v1576_v31  ;;  %1916 = vmatmul.f32.gmra.mxu0 %v1846_v61 }
 0x298   : > { %1831 = vst.msk [vmem:[#allocation2 + $0x90] sm:$0xff] %vm1812_vm9, %v1753_v15 }
 0x29b   : > { %1551 = vrot.lane.b32.xlu0 %v2316_v52, %s2483_s26  ;;  %1376 = vrot.lane.b32.xlu1 %v2293_v39, %s2482_s25 }
 0x29c   : > { %1392 = vrot.lane.b32.xlu2 %v2301_v32, %s2482_s25 }
 0x29d   : > { %v1769_v45 = vpop.permute.xlu0 %1768  ;;  %v1528_v50 = vpop.permute.xlu1 %1527 }
 0x29e   : > { %1839 = vst.msk [vmem:[#allocation2 + $0xd0] sm:$0xff] %vm1812_vm9, %v1769_v45  ;;  %v1530_v38 = vpop.permute.xlu2 %1529 }
 0x29f   : > { %1622 = vst.msk [vmem:[#allocation2 + $0x10] sm:$0xff] %vm1619_vm8, %v1528_v50  ;;  %v1863_v42 = vld [vmem:[#allocation2 + $0x90] sm:$0xff] }
 0x2a0   : > { %1967 = vmatmul.f32.gmra.mxu2 %v1863_v42  ;;  %1815 = vst.msk [vmem:[#allocation2 + $0x10] sm:$0xff] %vm1812_vm9, %v1721_v29 }
 0x2a1   : > { %1623 = vst.msk [vmem:[#allocation2 + $0x18] sm:$0xff] %vm1619_vm8, %v1530_v38 }
 0x2a3   : > { %1728 = vrot.lane.b32.xlu0 %v2340_v56, %s2484_s27  ;;  %1744 = vrot.lane.b32.xlu1 %v2348_v34, %s2484_s27 }
 0x2a4   : > { %1569 = vrot.lane.b32.xlu2 %v2325_v41, %s2483_s26 }
 0x2a5   : > { %v1369_v54 = vpop.permute.xlu0 %1368  ;;  %v1871_v49 = vld [vmem:[#allocation2 + $0xd0] sm:$0xff]  ;;  %v1385_v37 = vpop.permute.xlu1 %1384 }
 0x2a6   : > { %1446 = vst.msk [vmem:[#allocation2 + $0x98] sm:$0xff] %vm1426_vm7, %v1369_v54  ;;  %1991 = vmatmul.f32.gmra.mxu3 %v1871_v49  ;;  %v1387_v43 = vpop.permute.xlu2 %1386 }
 0x2a7   : > { %1454 = vst.msk [vmem:[#allocation2 + $0xd8] sm:$0xff] %vm1426_vm7, %v1385_v37  ;;  %v1847_v57 = vld [vmem:[#allocation2 + $0x10] sm:$0xff] }
 0x2a8   : > { %1647 = vst.msk [vmem:[#allocation2 + $0xd8] sm:$0xff] %vm1619_vm8, %v1578_v46  ;;  %1919 = vmatmul.f32.gmra.mxu0 %v1847_v57 }
 0x2a9   : > { %1455 = vst.msk [vmem:[#allocation2 + $0xe0] sm:$0xff] %vm1426_vm7, %v1387_v43 }
 0x2ab   : > { %1585 = vrot.lane.b32.xlu0 %v2333_v51, %s2483_s26  ;;  %1762 = vrot.lane.b32.xlu1 %v2357_v1, %s2484_s27 }
 0x2ac   : > { %1778 = vrot.lane.b32.xlu2 %v2365_v4, %s2484_s27 }
 0x2ad   : > { %v1737_v28 = vpop.permute.xlu0 %1736  ;;  %v1562_v2 = vpop.permute.xlu1 %1561 }
 0x2ae   : > { %1823 = vst.msk [vmem:[#allocation2 + $0x50] sm:$0xff] %vm1812_vm9, %v1737_v28  ;;  %v1564_v0 = vpop.permute.xlu2 %1563 }
 0x2af   : > { %1639 = vst.msk [vmem:[#allocation2 + $0x98] sm:$0xff] %vm1619_vm8, %v1562_v2 }
 0x2b3   : > { %1537 = vrot.lane.b32.xlu0 %v2309_v63, %s2483_s26  ;;  %1553 = vrot.lane.b32.xlu1 %v2317_v55, %s2483_s26  ;;  %s2368_s26 = sshll.u32 %s3972_s12, 8 }
 0x2b4   : > { %1730 = vrot.lane.b32.xlu2 %v2341_v5, %s2484_s27  ;;  %s3747_s20 = scalar_lea.vmem %s3876_s3, %s2368_s26 }
 0x2b5   : > { %v1755_v6 = vpop.permute.xlu0 %1754  ;;  %v1855_v35 = vld [vmem:[#allocation2 + $0x50] sm:$0xff]  ;;  %v1771_v40 = vpop.permute.xlu1 %1770 }
 0x2b6   : > { %1832 = vst.msk [vmem:[#allocation2 + $0x98] sm:$0xff] %vm1812_vm9, %v1755_v6  ;;  %1943 = vmatmul.f32.gmra.mxu1 %v1855_v35  ;;  %v1773_v8 = vpop.permute.xlu2 %1772 }
 0x2b7   : > { %1840 = vst.msk [vmem:[#allocation2 + $0xd8] sm:$0xff] %vm1812_vm9, %v1771_v40 }
 0x2bb   : > { %1746 = vrot.lane.b32.xlu0 %v2349_v7, %s2484_s27 }
 0x2bd   : > { %v1546_v33 = vpop.permute.xlu0 %1545  ;;  %v1864_v48 = vld [vmem:[#allocation2 + $0x98] sm:$0xff]  ;;  %v1371_v9 = vpop.permute.xlu1 %1370 }
 0x2be   : > { %1631 = vst.msk [vmem:[#allocation2 + $0x58] sm:$0xff] %vm1619_vm8, %v1546_v33  ;;  %1970 = vmatmul.f32.gmra.mxu2 %v1864_v48  ;;  %v1872_v10 = vld [vmem:[#allocation2 + $0xd8] sm:$0xff]  ;;  %v1373_v60 = vpop.permute.xlu2 %1372 }
 0x2bf   : > { %1447 = vst.msk [vmem:[#allocation2 + $0xa0] sm:$0xff] %vm1426_vm7, %v1371_v9  ;;  %1994 = vmatmul.f32.gmra.mxu3 %v1872_v10 }
 0x2c0   : > { %1640 = vst.msk [vmem:[#allocation2 + $0xa0] sm:$0xff] %vm1619_vm8, %v1564_v0 }
 0x2c1   : > { %1448 = vst.msk [vmem:[#allocation2 + $0xa8] sm:$0xff] %vm1426_vm7, %v1373_v60 }
 0x2c5   : > { %v1723_v62 = vpop.permute.xlu0 %1722  ;;  %v1739_v11 = vpop.permute.xlu1 %1738 }
 0x2c6   : > { %1816 = vst.msk [vmem:[#allocation2 + $0x18] sm:$0xff] %vm1812_vm9, %v1723_v62  ;;  %v1741_v12 = vpop.permute.xlu2 %1740 }
 0x2c7   : > { %1824 = vst.msk [vmem:[#allocation2 + $0x58] sm:$0xff] %vm1812_vm9, %v1739_v11 }
 0x2cd   : > { %v1580_v53 = vpop.permute.xlu0 %1579  ;;  %v1848_v13 = vld [vmem:[#allocation2 + $0x18] sm:$0xff]  ;;  %v1757_v58 = vpop.permute.xlu1 %1756 }
 0x2ce   : > { %1648 = vst.msk [vmem:[#allocation2 + $0xe0] sm:$0xff] %vm1619_vm8, %v1580_v53  ;;  %1922 = vmatmul.f32.gmra.mxu0 %v1848_v13  ;;  %v1856_v44 = vld [vmem:[#allocation2 + $0x58] sm:$0xff]  ;;  %v1759_v14 = vpop.permute.xlu2 %1758 }
 0x2cf   : > { %1833 = vst.msk [vmem:[#allocation2 + $0xa0] sm:$0xff] %vm1812_vm9, %v1757_v58  ;;  %1946 = vmatmul.f32.gmra.mxu1 %v1856_v44 }
 0x2d0   : > { %1841 = vst.msk [vmem:[#allocation2 + $0xe0] sm:$0xff] %vm1812_vm9, %v1773_v8 }
 0x2d5   : > { %v1532_v3 = vpop.permute.xlu0 %1531  ;;  %v1548_v15 = vpop.permute.xlu1 %1547 }
 0x2d6   : > { %1624 = vst.msk [vmem:[#allocation2 + $0x20] sm:$0xff] %vm1619_vm8, %v1532_v3  ;;  %v1865_v16 = vld [vmem:[#allocation2 + $0xa0] sm:$0xff]  ;;  %v1550_v47 = vpop.permute.xlu2 %1549 }
 0x2d7   : > { %1632 = vst.msk [vmem:[#allocation2 + $0x60] sm:$0xff] %vm1619_vm8, %v1548_v15  ;;  %1973 = vmatmul.f32.gmra.mxu2 %v1865_v16  ;;  %v1873_v17 = vld [vmem:[#allocation2 + $0xe0] sm:$0xff] }
 0x2d8   : > { %1997 = vmatmul.f32.gmra.mxu3 %v1873_v17  ;;  %1825 = vst.msk [vmem:[#allocation2 + $0x60] sm:$0xff] %vm1812_vm9, %v1741_v12 }
 0x2d9   : > { %1633 = vst.msk [vmem:[#allocation2 + $0x68] sm:$0xff] %vm1619_vm8, %v1550_v47 }
 0x2dd   : > { %v1389_v18 = vpop.permute.xlu0 %1388  ;;  %v1725_v19 = vpop.permute.xlu1 %1724 }
 0x2de   : > { %1456 = vst.msk [vmem:[#allocation2 + $0xe8] sm:$0xff] %vm1426_vm7, %v1389_v18  ;;  %v1727_v21 = vpop.permute.xlu2 %1726 }
 0x2df   : > { %1817 = vst.msk [vmem:[#allocation2 + $0x20] sm:$0xff] %vm1812_vm9, %v1725_v19  ;;  %v1857_v20 = vld [vmem:[#allocation2 + $0x60] sm:$0xff] }
 0x2e0   : > { %1949 = vmatmul.f32.gmra.mxu1 %v1857_v20 }
 0x2e5   : > { %v1566_v22 = vpop.permute.xlu0 %1565  ;;  %v1582_v23 = vpop.permute.xlu1 %1581 }
 0x2e6   : > { %1641 = vst.msk [vmem:[#allocation2 + $0xa8] sm:$0xff] %vm1619_vm8, %v1566_v22  ;;  %v1849_v24 = vld [vmem:[#allocation2 + $0x20] sm:$0xff]  ;;  %v1584_v25 = vpop.permute.xlu2 %1583 }
 0x2e7   : > { %1649 = vst.msk [vmem:[#allocation2 + $0xe8] sm:$0xff] %vm1619_vm8, %v1582_v23  ;;  %1925 = vmatmul.f32.gmra.mxu0 %v1849_v24 }
 0x2e8   : > { %1834 = vst.msk [vmem:[#allocation2 + $0xa8] sm:$0xff] %vm1812_vm9, %v1759_v14 }
 0x2ed   : > { %v1775_v26 = vpop.permute.xlu0 %1774  ;;  %v1534_v27 = vpop.permute.xlu1 %1533 }
 0x2ee   : > { %1842 = vst.msk [vmem:[#allocation2 + $0xe8] sm:$0xff] %vm1812_vm9, %v1775_v26  ;;  %v1536_v30 = vpop.permute.xlu2 %1535 }
 0x2ef   : > { %1625 = vst.msk [vmem:[#allocation2 + $0x28] sm:$0xff] %vm1619_vm8, %v1534_v27  ;;  %v1866_v29 = vld [vmem:[#allocation2 + $0xa8] sm:$0xff] }
 0x2f0   : > { %1976 = vmatmul.f32.gmra.mxu2 %v1866_v29  ;;  %1818 = vst.msk [vmem:[#allocation2 + $0x28] sm:$0xff] %vm1812_vm9, %v1727_v21 }
 0x2f1   : > { %v1962_v36 = vpop.f32.mrf.mxu2  ;;  %1626 = vst.msk [vmem:[#allocation2 + $0x30] sm:$0xff] %vm1619_vm8, %v1536_v30 }
 0x2f2   : > { %v1963_v31 = vadd.f32 %v3737_v59, %v1962_v36  ;;  %v1986_v61 = vpop.f32.mrf.mxu3 }
 0x2f3   : > { %v1987_v52 = vadd.f32 %v3737_v59, %v1986_v61 }
 0x2f4   : > { %v2026_v39 = vmax.f32 %v1963_v31, 0.0 }
 0x2f5   : > { %v1375_v46 = vpop.permute.xlu0 %1374  ;;  %v1874_v32 = vld [vmem:[#allocation2 + $0xe8] sm:$0xff]  ;;  %v2034_v45 = vmax.f32 %v1987_v52, 0.0  ;;  %v1391_v50 = vpop.permute.xlu1 %1390 }
 0x2f6   : > { %2059 = vst.msk [vmem:[%s3747_s20 + $0x80] sm:$0xff] %vm2042_vm10, %v2026_v39  ;;  %2000 = vmatmul.f32.gmra.mxu3 %v1874_v32  ;;  %v1393_v56 = vpop.permute.xlu2 %1392 }
 0x2f7   : > { %1449 = vst.msk [vmem:[#allocation2 + $0xb0] sm:$0xff] %vm1426_vm7, %v1375_v46  ;;  %v1850_v42 = vld [vmem:[#allocation2 + $0x28] sm:$0xff] }
 0x2f8   : > { %2067 = vst.msk [vmem:[%s3747_s20 + $0xc0] sm:$0xff] %vm2042_vm10, %v2034_v45  ;;  %1928 = vmatmul.f32.gmra.mxu0 %v1850_v42 }
 0x2f9   : > { %1457 = vst.msk [vmem:[#allocation2 + $0xf0] sm:$0xff] %vm1426_vm7, %v1391_v50 }
 0x2fa   : > { %1650 = vst.msk [vmem:[#allocation2 + $0xf0] sm:$0xff] %vm1619_vm8, %v1584_v25 }
 0x2fb   : > { %v1914_v34 = vpop.f32.mrf.mxu0  ;;  %1458 = vst.msk [vmem:[#allocation2 + $0xf8] sm:$0xff] %vm1426_vm7, %v1393_v56 }
 0x2fc   : > { %v1915_v38 = vadd.f32 %v3737_v59, %v1914_v34  ;;  %v1938_v41 = vpop.f32.mrf.mxu1 }
 0x2fd   : > { %v1743_v54 = vpop.permute.xlu0 %1742  ;;  %v1939_v49 = vadd.f32 %v3737_v59, %v1938_v41  ;;  %v1568_v37 = vpop.permute.xlu1 %1567 }
 0x2fe   : > { %v2010_v57 = vmax.f32 %v1915_v38, 0.0  ;;  %1826 = vst.msk [vmem:[#allocation2 + $0x68] sm:$0xff] %vm1812_vm9, %v1743_v54  ;;  %v1570_v48 = vpop.permute.xlu2 %1569 }
 0x2ff   : > { %v2018_v51 = vmax.f32 %v1939_v49, 0.0  ;;  %1642 = vst.msk [vmem:[#allocation2 + $0xb0] sm:$0xff] %vm1619_vm8, %v1568_v37 }
 0x300   : > { %2043 = vst.msk [vmem:[%s3747_s20] sm:$0xff] %vm2042_vm10, %v2010_v57 }
 0x301   : > { %2051 = vst.msk [vmem:[%s3747_s20 + $0x40] sm:$0xff] %vm2042_vm10, %v2018_v51 }
 0x305   : > { %v1761_v1 = vpop.permute.xlu0 %1760  ;;  %v1858_v43 = vld [vmem:[#allocation2 + $0x68] sm:$0xff]  ;;  %v1777_v4 = vpop.permute.xlu1 %1776 }
 0x306   : > { %1835 = vst.msk [vmem:[#allocation2 + $0xb0] sm:$0xff] %vm1812_vm9, %v1761_v1  ;;  %1952 = vmatmul.f32.gmra.mxu1 %v1858_v43  ;;  %v1779_v53 = vpop.permute.xlu2 %1778 }
 0x307   : > { %1843 = vst.msk [vmem:[#allocation2 + $0xf0] sm:$0xff] %vm1812_vm9, %v1777_v4 }
 0x30a   : > { %v1965_v28 = vpop.f32.mrf.mxu2 }
 0x30b   : > { %v1966_v2 = vadd.f32 %v3737_v59, %v1965_v28  ;;  %v1989_v63 = vpop.f32.mrf.mxu3 }
 0x30c   : > { %v1990_v55 = vadd.f32 %v3737_v59, %v1989_v63 }
 0x30d   : > { %v1552_v0 = vpop.permute.xlu0 %1551  ;;  %v1867_v5 = vld [vmem:[#allocation2 + $0xb0] sm:$0xff]  ;;  %v2027_v6 = vmax.f32 %v1966_v2, 0.0  ;;  %v1377_v35 = vpop.permute.xlu1 %1376 }
 0x30e   : > { %1634 = vst.msk [vmem:[#allocation2 + $0x70] sm:$0xff] %vm1619_vm8, %v1552_v0  ;;  %1979 = vmatmul.f32.gmra.mxu2 %v1867_v5  ;;  %v2035_v40 = vmax.f32 %v1990_v55, 0.0  ;;  %v1875_v7 = vld [vmem:[#allocation2 + $0xf0] sm:$0xff]  ;;  %v1941_v8 = vpop.f32.mrf.mxu1  ;;  %v1731_v18 = vpop.permute.xlu2 %1730 }
 0x30f   : > { %2060 = vst.msk [vmem:[%s3747_s20 + $0x88] sm:$0xff] %vm2042_vm10, %v2027_v6  ;;  %2003 = vmatmul.f32.gmra.mxu3 %v1875_v7  ;;  %v1942_v33 = vadd.f32 %v3737_v59, %v1941_v8 }
 0x310   : > { %2068 = vst.msk [vmem:[%s3747_s20 + $0xc8] sm:$0xff] %vm2042_vm10, %v2035_v40 }
 0x311   : > { %1450 = vst.msk [vmem:[#allocation2 + $0xb8] sm:$0xff] %vm1426_vm7, %v1377_v35  ;;  %v2019_v9 = vmax.f32 %v1942_v33, 0.0 }
 0x312   : > { %1643 = vst.msk [vmem:[#allocation2 + $0xb8] sm:$0xff] %vm1619_vm8, %v1570_v48 }
 0x313   : > { %2052 = vst.msk [vmem:[%s3747_s20 + $0x48] sm:$0xff] %vm2042_vm10, %v2019_v9 }
 0x314   : > { %v1917_v10 = vpop.f32.mrf.mxu0 }
 0x315   : > { %v1729_v60 = vpop.permute.xlu0 %1728  ;;  %v1918_v62 = vadd.f32 %v3737_v59, %v1917_v10  ;;  %v1745_v11 = vpop.permute.xlu1 %1744 }
 0x316   : > { %1819 = vst.msk [vmem:[#allocation2 + $0x30] sm:$0xff] %vm1812_vm9, %v1729_v60 }
 0x317   : > { %v2011_v12 = vmax.f32 %v1918_v62, 0.0  ;;  %1827 = vst.msk [vmem:[#allocation2 + $0x70] sm:$0xff] %vm1812_vm9, %v1745_v11 }
 0x319   : > { %2044 = vst.msk [vmem:[%s3747_s20 + $0x8] sm:$0xff] %vm2042_vm10, %v2011_v12 }
 0x31d   : > { %v1586_v13 = vpop.permute.xlu0 %1585  ;;  %v1851_v58 = vld [vmem:[#allocation2 + $0x30] sm:$0xff]  ;;  %v1763_v44 = vpop.permute.xlu1 %1762 }
 0x31e   : > { %1651 = vst.msk [vmem:[#allocation2 + $0xf8] sm:$0xff] %vm1619_vm8, %v1586_v13  ;;  %1931 = vmatmul.f32.gmra.mxu0 %v1851_v58  ;;  %v1859_v14 = vld [vmem:[#allocation2 + $0x70] sm:$0xff] }
 0x31f   : > { %1836 = vst.msk [vmem:[#allocation2 + $0xb8] sm:$0xff] %vm1812_vm9, %v1763_v44  ;;  %1955 = vmatmul.f32.gmra.mxu1 %v1859_v14 }
 0x320   : > { %1844 = vst.msk [vmem:[#allocation2 + $0xf8] sm:$0xff] %vm1812_vm9, %v1779_v53 }
 0x323   : > { %v1968_v3 = vpop.f32.mrf.mxu2 }
 0x324   : > { %v1969_v15 = vadd.f32 %v3737_v59, %v1968_v3 }
 0x325   : > { %v1538_v16 = vpop.permute.xlu0 %1537  ;;  %v1554_v17 = vpop.permute.xlu1 %1553 }
 0x326   : > { %1627 = vst.msk [vmem:[#allocation2 + $0x38] sm:$0xff] %vm1619_vm8, %v1538_v16  ;;  %v2028_v47 = vmax.f32 %v1969_v15, 0.0  ;;  %v1868_v19 = vld [vmem:[#allocation2 + $0xb8] sm:$0xff]  ;;  %v1920_v20 = vpop.f32.mrf.mxu0 }
 0x327   : > { %1635 = vst.msk [vmem:[#allocation2 + $0x78] sm:$0xff] %vm1619_vm8, %v1554_v17  ;;  %1982 = vmatmul.f32.gmra.mxu2 %v1868_v19  ;;  %v1876_v21 = vld [vmem:[#allocation2 + $0xf8] sm:$0xff]  ;;  %v1921_v22 = vadd.f32 %v3737_v59, %v1920_v20 }
 0x328   : > { %2061 = vst.msk [vmem:[%s3747_s20 + $0x90] sm:$0xff] %vm2042_vm10, %v2028_v47  ;;  %2006 = vmatmul.f32.gmra.mxu3 %v1876_v21 }
 0x329   : > { %v1992_v23 = vpop.f32.mrf.mxu3  ;;  %1820 = vst.msk [vmem:[#allocation2 + $0x38] sm:$0xff] %vm1812_vm9, %v1731_v18  ;;  %v2012_v24 = vmax.f32 %v1921_v22, 0.0 }
 0x32a   : > { %v1993_v25 = vadd.f32 %v3737_v59, %v1992_v23 }
 0x32b   : > { %2045 = vst.msk [vmem:[%s3747_s20 + $0x10] sm:$0xff] %vm2042_vm10, %v2012_v24 }
 0x32c   : > { %v2036_v26 = vmax.f32 %v1993_v25, 0.0 }
 0x32d   : > { %v1747_v27 = vpop.permute.xlu0 %1746 }
 0x32e   : > { %2069 = vst.msk [vmem:[%s3747_s20 + $0xd0] sm:$0xff] %vm2042_vm10, %v2036_v26 }
 0x32f   : > { %1828 = vst.msk [vmem:[#allocation2 + $0x78] sm:$0xff] %vm1812_vm9, %v1747_v27 }
 0x330   : > { %v1852_v29 = vld [vmem:[#allocation2 + $0x38] sm:$0xff] }
 0x331   : > { %1934 = vmatmul.f32.gmra.mxu0 %v1852_v29 }
 0x333   : > { %v1944_v30 = vpop.f32.mrf.mxu1 }
 0x334   : > { %v1945_v36 = vadd.f32 %v3737_v59, %v1944_v30 }
 0x336   : > { %v2020_v31 = vmax.f32 %v1945_v36, 0.0  ;;  %v1860_v61 = vld [vmem:[#allocation2 + $0x78] sm:$0xff] }
 0x337   : > { %1958 = vmatmul.f32.gmra.mxu1 %v1860_v61 }
 0x338   : > { %2053 = vst.msk [vmem:[%s3747_s20 + $0x50] sm:$0xff] %vm2042_vm10, %v2020_v31 }
 0x341   : > { %v1971_v52 = vpop.f32.mrf.mxu2 }
 0x342   : > { %v1972_v39 = vadd.f32 %v3737_v59, %v1971_v52  ;;  %v1995_v46 = vpop.f32.mrf.mxu3 }
 0x343   : > { %v1996_v32 = vadd.f32 %v3737_v59, %v1995_v46 }
 0x344   : > { %v2029_v45 = vmax.f32 %v1972_v39, 0.0 }
 0x345   : > { %v2037_v50 = vmax.f32 %v1996_v32, 0.0 }
 0x346   : > { %2062 = vst.msk [vmem:[%s3747_s20 + $0x98] sm:$0xff] %vm2042_vm10, %v2029_v45 }
 0x347   : > { %2070 = vst.msk [vmem:[%s3747_s20 + $0xd8] sm:$0xff] %vm2042_vm10, %v2037_v50 }
 0x34b   : > { %v1923_v42 = vpop.f32.mrf.mxu0 }
 0x34c   : > { %v1924_v56 = vadd.f32 %v3737_v59, %v1923_v42  ;;  %v1947_v34 = vpop.f32.mrf.mxu1 }
 0x34d   : > { %v1948_v38 = vadd.f32 %v3737_v59, %v1947_v34 }
 0x34e   : > { %v2013_v41 = vmax.f32 %v1924_v56, 0.0 }
 0x34f   : > { %v2021_v54 = vmax.f32 %v1948_v38, 0.0 }
 0x350   : > { %2046 = vst.msk [vmem:[%s3747_s20 + $0x18] sm:$0xff] %vm2042_vm10, %v2013_v41 }
 0x351   : > { %2054 = vst.msk [vmem:[%s3747_s20 + $0x58] sm:$0xff] %vm2042_vm10, %v2021_v54 }
 0x35a   : > { %v1974_v49 = vpop.f32.mrf.mxu2 }
 0x35b   : > { %v1975_v37 = vadd.f32 %v3737_v59, %v1974_v49  ;;  %v1998_v57 = vpop.f32.mrf.mxu3 }
 0x35c   : > { %v1999_v51 = vadd.f32 %v3737_v59, %v1998_v57 }
 0x35d   : > { %v2030_v1 = vmax.f32 %v1975_v37, 0.0  ;;  %v1950_v43 = vpop.f32.mrf.mxu1 }
 0x35e   : > { %v2038_v4 = vmax.f32 %v1999_v51, 0.0  ;;  %v1951_v28 = vadd.f32 %v3737_v59, %v1950_v43 }
 0x35f   : > { %2063 = vst.msk [vmem:[%s3747_s20 + $0xa0] sm:$0xff] %vm2042_vm10, %v2030_v1 }
 0x360   : > { %2071 = vst.msk [vmem:[%s3747_s20 + $0xe0] sm:$0xff] %vm2042_vm10, %v2038_v4  ;;  %v2022_v2 = vmax.f32 %v1951_v28, 0.0 }
 0x362   : > { %2055 = vst.msk [vmem:[%s3747_s20 + $0x60] sm:$0xff] %vm2042_vm10, %v2022_v2 }
 0x364   : > { %v1926_v63 = vpop.f32.mrf.mxu0 }
 0x365   : > { %v1927_v55 = vadd.f32 %v3737_v59, %v1926_v63 }
 0x367   : > { %v2014_v0 = vmax.f32 %v1927_v55, 0.0 }
 0x369   : > { %2047 = vst.msk [vmem:[%s3747_s20 + $0x20] sm:$0xff] %vm2042_vm10, %v2014_v0 }
 0x373   : > { %v1977_v5 = vpop.f32.mrf.mxu2 }
 0x374   : > { %v1978_v6 = vadd.f32 %v3737_v59, %v1977_v5 }
 0x375   : > { %v1929_v35 = vpop.f32.mrf.mxu0 }
 0x376   : > { %v2031_v40 = vmax.f32 %v1978_v6, 0.0  ;;  %v1930_v7 = vadd.f32 %v3737_v59, %v1929_v35 }
 0x378   : > { %2064 = vst.msk [vmem:[%s3747_s20 + $0xa8] sm:$0xff] %vm2042_vm10, %v2031_v40  ;;  %v2015_v8 = vmax.f32 %v1930_v7, 0.0 }
 0x379   : > { %v2001_v33 = vpop.f32.mrf.mxu3 }
 0x37a   : > { %v2002_v48 = vadd.f32 %v3737_v59, %v2001_v33  ;;  %2048 = vst.msk [vmem:[%s3747_s20 + $0x28] sm:$0xff] %vm2042_vm10, %v2015_v8 }
 0x37c   : > { %v2039_v9 = vmax.f32 %v2002_v48, 0.0 }
 0x37e   : > { %2072 = vst.msk [vmem:[%s3747_s20 + $0xe8] sm:$0xff] %vm2042_vm10, %v2039_v9 }
 0x383   : > { %v1953_v10 = vpop.f32.mrf.mxu1 }
 0x384   : > { %v1954_v60 = vadd.f32 %v3737_v59, %v1953_v10 }
 0x386   : > { %v2023_v62 = vmax.f32 %v1954_v60, 0.0 }
 0x388   : > { %2056 = vst.msk [vmem:[%s3747_s20 + $0x68] sm:$0xff] %vm2042_vm10, %v2023_v62 }
 0x391   : > { %v1980_v11 = vpop.f32.mrf.mxu2 }
 0x392   : > { %v1981_v12 = vadd.f32 %v3737_v59, %v1980_v11  ;;  %v2004_v53 = vpop.f32.mrf.mxu3 }
 0x393   : > { %v2005_v13 = vadd.f32 %v3737_v59, %v2004_v53 }
 0x394   : > { %v2032_v58 = vmax.f32 %v1981_v12, 0.0 }
 0x395   : > { %v2040_v44 = vmax.f32 %v2005_v13, 0.0 }
 0x396   : > { %2065 = vst.msk [vmem:[%s3747_s20 + $0xb0] sm:$0xff] %vm2042_vm10, %v2032_v58 }
 0x397   : > { %2073 = vst.msk [vmem:[%s3747_s20 + $0xf0] sm:$0xff] %vm2042_vm10, %v2040_v44 }
 0x39b   : > { %v1932_v14 = vpop.f32.mrf.mxu0 }
 0x39c   : > { %v1933_v3 = vadd.f32 %v3737_v59, %v1932_v14  ;;  %v1956_v15 = vpop.f32.mrf.mxu1 }
 0x39d   : > { %v1957_v16 = vadd.f32 %v3737_v59, %v1956_v15 }
 0x39e   : > { %v2016_v17 = vmax.f32 %v1933_v3, 0.0 }
 0x39f   : > { %v2024_v47 = vmax.f32 %v1957_v16, 0.0 }
 0x3a0   : > { %2049 = vst.msk [vmem:[%s3747_s20 + $0x30] sm:$0xff] %vm2042_vm10, %v2016_v17 }
 0x3a1   : > { %2057 = vst.msk [vmem:[%s3747_s20 + $0x70] sm:$0xff] %vm2042_vm10, %v2024_v47 }
 0x3aa   : > { %v1983_v18 = vpop.f32.mrf.mxu2 }
 0x3ab   : > { %v1984_v19 = vadd.f32 %v3737_v59, %v1983_v18  ;;  %v2007_v20 = vpop.f32.mrf.mxu3 }
 0x3ac   : > { %v2008_v21 = vadd.f32 %v3737_v59, %v2007_v20 }
 0x3ad   : > { %v2033_v22 = vmax.f32 %v1984_v19, 0.0 }
 0x3ae   : > { %v2041_v23 = vmax.f32 %v2008_v21, 0.0  ;;  %v1935_v24 = vpop.f32.mrf.mxu0 }
 0x3af   : > { %2066 = vst.msk [vmem:[%s3747_s20 + $0xb8] sm:$0xff] %vm2042_vm10, %v2033_v22  ;;  %v1936_v25 = vadd.f32 %v3737_v59, %v1935_v24 }
 0x3b0   : > { %2074 = vst.msk [vmem:[%s3747_s20 + $0xf8] sm:$0xff] %vm2042_vm10, %v2041_v23 }
 0x3b1   : > { %v2017_v26 = vmax.f32 %v1936_v25, 0.0 }
 0x3b3   : > { %2050 = vst.msk [vmem:[%s3747_s20 + $0x38] sm:$0xff] %vm2042_vm10, %v2017_v26 }
 0x3b4   : > { %v1959_v27 = vpop.f32.mrf.mxu1 }
 0x3b5   : > { %v1960_v29 = vadd.f32 %v3737_v59, %v1959_v27 }
 0x3b7   : > { %v2025_v30 = vmax.f32 %v1960_v29, 0.0 }
 0x3b9   : > { %2058 = vst.msk [vmem:[%s3747_s20 + $0x78] sm:$0xff] %vm2042_vm10, %v2025_v30 }
 0x3ba PF: > { %s13_s14 = sadd.s32 1, %s2474_s14   ;;  %s3967_s12 = smov %s2470_s13 }
 0x3bb   : > { %p10_p5 = scmp.ge.s32.totalorder %s13_s14, 4   ;;  %s3968_s13 = smov %s3970_s15 }
 0x3bd   :  { %12 = sbr.rel (!%p10_p5) target bundleno = 2 (0x2), region = 65 }

</bundles_post_ra>
